<compile_context>
chip_gen: v5e
topology: v5e:2x2
jax: 0.10.0
libtpu: 0.0.40
codegen_flags: <defaults>
</compile_context>

<pallas_src>
import functools

import jax
import jax.numpy as jnp
from jax import lax
from jax.experimental import pallas as pl
from jax.experimental.pallas import tpu as pltpu


def deepconn_kernel(win_ref, rr_ref, w_conv_ref, b_conv_ref, m_fold_ref,
                    w_head_ref, b_head_ref, w_c01_ref, b_all_ref, score_ref):
    """One batch tile of the DeepConn + Gumbel forward.

    win_ref:    (2, L+2, TB, E) bf16  zero-padded [user, item] review embeddings;
                                      length sits on a leading (untiled) dim so
                                      the 3 conv taps are plain slab slices.
    rr_ref:     (2, TB, 5)      f32   [user, item] rating-ratio vectors
    w_conv_ref: (3, E, 2F)      bf16  conv taps, columns = [user filters | item]
    b_conv_ref: (1, 2F)         f32   [uconv_b | iconv_b]
    m_fold_ref: (2, 2F, 5)      f32   folded get_*fea -> Linear(2n,5) -> c1d tap 2
    w_head_ref: (2, 5, 15)      f32   per-stream packed [mean | var | mlp{1,2}]
    b_head_ref: (2, 1, 15)      f32
    w_c01_ref:  (2, 5, 5)       f32   Conv1d taps 0,1 as (in, out) matrices
    b_all_ref:  (1, 5)          f32   c1d_b + all folded biases
    score_ref:  (TB, 1)         f32
    """
    _, LP, TB, E = win_ref.shape
    L = LP - 2
    F2 = w_conv_ref.shape[2]

    # Conv2d(1, F, (3, E), padding=(1, 0)) for user+item at once: three shifted
    # tap matmuls (bf16 MXU, f32 accumulation).  Rows are (stream, position,
    # batch); columns are [user filters | item filters].
    acc = jnp.zeros((2 * L * TB, F2), jnp.float32)
    for k in range(3):                                     # static -> unrolled
        tap = win_ref[:, k:k + L, :, :].reshape(2 * L * TB, E)
        acc = acc + jnp.dot(tap, w_conv_ref[k],
                            preferred_element_type=jnp.float32)
    conv = jnp.maximum(acc + b_conv_ref[...], 0.0)         # bias + ReLU (f32)
    pooled = jnp.max(conv.reshape(2, L, TB, F2), axis=1)   # max-pool over length

    # Per-stream rating-ratio head: one packed (5, 15) = [mean|var|mlp] dot,
    # then the Gumbel pdf at ratings 1..5 (all f32 VPU/EUP work).
    rating = (lax.broadcasted_iota(jnp.int32, (1, 5), 1) + 1).astype(jnp.float32)

    def rr_head(s):
        d = (jnp.dot(rr_ref[s], w_head_ref[s],
                     preferred_element_type=jnp.float32) + b_head_ref[s])
        mean, var, mlp = d[:, 0:5], d[:, 5:10], d[:, 10:15]
        var = var * var + 0.2
        z = jnp.exp((rating - mean) / var)
        return z * jnp.exp(-z) / var, mlp                  # Gumbel pdf, mlp(rr)

    out1, urr = rr_head(0)
    out2, irr = rr_head(1)

    # Conv1d(5, 5, 3) over the length-3 sequence [out1, out2, feature5].  The
    # feature5 branch (get_*fea -> Linear(2n, 5) -> conv tap 2) is an exactly
    # linear chain pre-folded into the per-stream (2F, 5) matrices m_fold.
    conv1 = (jnp.dot(out1, w_c01_ref[0], preferred_element_type=jnp.float32)
             + jnp.dot(out2, w_c01_ref[1], preferred_element_type=jnp.float32)
             + jnp.dot(pooled[0], m_fold_ref[0], preferred_element_type=jnp.float32)
             + jnp.dot(pooled[1], m_fold_ref[1], preferred_element_type=jnp.float32)
             + b_all_ref[...])                             # (TB, 5)

    # score = sum(conv1 * mlp1(u_rr) * mlp2(i_rr), -1)
    score_ref[...] = jnp.sum(conv1 * urr * irr, axis=-1, keepdims=True)


def _pack_params(params):
    """Pre-pack / pre-fold PyTorch-layout weights into kernel operands."""
    F = params["uconv_w"].shape[0]
    n = params["ufea_w"].shape[0]

    with jax.default_matmul_precision("highest"):
        # Conv2d weights (F,1,3,E) -> per-tap (E, 2F) = [user | item] cols; bf16.
        w_conv = jnp.stack([
            jnp.concatenate([params["uconv_w"][:, 0, k, :].T,
                             params["iconv_w"][:, 0, k, :].T], axis=1)
            for k in range(3)]).astype(jnp.bfloat16)                  # (3, E, 2F)
        b_conv = jnp.concatenate([params["uconv_b"],
                                  params["iconv_b"]])[None, :]        # (1, 2F)

        # Conv1d(5,5,3) taps as (in, out) matrices.
        c0 = params["c1d_w"][:, :, 0].T
        c1 = params["c1d_w"][:, :, 1].T
        c2 = params["c1d_w"][:, :, 2].T
        w_c01 = jnp.stack([c0, c1])                                   # (2, 5, 5)

        # Fold the exactly-linear chain pooled -> get_*fea -> Linear(2n,5) -> tap2
        # into one (2F, 5) matrix per stream (dropout == identity at inference).
        wl = params["lin_w"].T                                        # (2n, 5)
        wl_u, wl_i = wl[:n], wl[n:]
        mu = params["ufea_w"].T @ wl_u @ c2                           # (F, 5)
        mi = params["ifea_w"].T @ wl_i @ c2
        zero = jnp.zeros((F, 5), jnp.float32)
        m_fold = jnp.stack([jnp.concatenate([mu, zero], axis=0),
                            jnp.concatenate([zero, mi], axis=0)])     # (2, 2F, 5)
        b_all = (params["c1d_b"]
                 + params["ufea_b"] @ wl_u @ c2
                 + params["ifea_b"] @ wl_i @ c2
                 + params["lin_b"] @ c2)[None, :]                     # (1, 5)

        # Packed per-stream rating-ratio head: [mean | var | mlp{1,2}].
        w_head = jnp.stack([
            jnp.concatenate([params["mean_w"].T, params["var_w"].T,
                             params["mlp1_w"].T], axis=1),
            jnp.concatenate([params["mean_w"].T, params["var_w"].T,
                             params["mlp2_w"].T], axis=1)])           # (2, 5, 15)
        b_head = jnp.stack([
            jnp.concatenate([params["mean_b"], params["var_b"], params["mlp1_b"]]),
            jnp.concatenate([params["mean_b"], params["var_b"], params["mlp2_b"]]),
        ])[:, None, :]                                                # (2, 1, 15)

    return w_conv, b_conv, m_fold, w_head, b_head, w_c01, b_all


@functools.partial(jax.jit, static_argnames=("block_b",))
def deepconn_forward(params, word_emb, u_ids, i_ids, u_rr, i_rr, *, block_b=16):
    """Pallas DeepConn (Gumbel) forward.  Returns scores of shape (B,).

    block_b: batch tile (multiple of 16).  For realistic shapes pick the largest
    multiple of 16 such that 2 double-buffered bf16 window blocks
    (2 * 2*block_b*(L+2)*E*2 bytes) plus the (2*block_b*L, 2F) f32 conv
    accumulator stay ~<= 24-28 MiB on v7x (64 MiB physical VMEM); roughly twice
    that headroom exists on v5e/v6e (128 MiB).
    """
    B, L = u_ids.shape
    E = word_emb.shape[1]
    F = params["uconv_w"].shape[0]
    F2 = 2 * F
    LP = L + 2
    TB = block_b
    assert TB % 16 == 0, "block_b must be a multiple of 16 (bf16 sublane packing)"

    nb = (B + TB - 1) // TB
    Bp = nb * TB

    # Frozen-embedding gather + zero pad stay in the wrapper (pure layout
    # plumbing); gathered directly in (stream, length, batch, E) order so the
    # kernel's tap slices live on an untiled leading dim.  bf16 halves the HBM
    # bytes of the only large operand; all accumulation stays f32.
    ids = jnp.stack([u_ids, i_ids])                                   # (2, B, L)
    ids = jnp.swapaxes(ids, 1, 2)                                     # (2, L, B)
    if Bp != B:
        ids = jnp.pad(ids, ((0, 0), (0, 0), (0, Bp - B)))
    emb = jnp.take(word_emb.astype(jnp.bfloat16), ids, axis=0)        # (2, L, Bp, E)
    win = jnp.pad(emb, ((0, 0), (1, 1), (0, 0), (0, 0)))              # (2, LP, Bp, E)

    rr = jnp.stack([u_rr, i_rr]).astype(jnp.float32)                  # (2, B, 5)
    if Bp != B:
        rr = jnp.pad(rr, ((0, 0), (0, Bp - B), (0, 0)))

    w_conv, b_conv, m_fold, w_head, b_head, w_c01, b_all = _pack_params(params)

    # VMEM budget: double-buffered streaming blocks + resident weights + conv acc.
    blk_bytes = 2 * LP * TB * E * 2 + 2 * TB * 5 * 4 + TB * 4
    w_bytes = (3 * E * F2 * 2 + F2 * 4 + 2 * F2 * 5 * 4
               + 2 * 5 * 15 * 4 + 2 * 15 * 4 + 2 * 25 * 4 + 5 * 4)
    vmem_est = 2 * blk_bytes + 2 * w_bytes + 2 * (2 * L * TB * F2 * 4) + (4 << 20)
    vmem_limit = int(min(64 << 20, max(16 << 20, vmem_est)))

    grid_spec = pltpu.PrefetchScalarGridSpec(
        num_scalar_prefetch=0,
        grid=(nb,),
        in_specs=[
            pl.BlockSpec((2, LP, TB, E), lambda b: (0, 0, b, 0)),   # windows
            pl.BlockSpec((2, TB, 5), lambda b: (0, b, 0)),          # rating ratios
            pl.BlockSpec((3, E, F2), lambda b: (0, 0, 0)),          # conv taps
            pl.BlockSpec((1, F2), lambda b: (0, 0)),                # conv bias
            pl.BlockSpec((2, F2, 5), lambda b: (0, 0, 0)),          # folded fea->c1d
            pl.BlockSpec((2, 5, 15), lambda b: (0, 0, 0)),          # packed rr head W
            pl.BlockSpec((2, 1, 15), lambda b: (0, 0, 0)),          # packed rr head b
            pl.BlockSpec((2, 5, 5), lambda b: (0, 0, 0)),           # conv1d taps 0,1
            pl.BlockSpec((1, 5), lambda b: (0, 0)),                 # combined bias
        ],
        out_specs=pl.BlockSpec((TB, 1), lambda b: (b, 0)),
    )

    score = pl.pallas_call(
        deepconn_kernel,
        out_shape=jax.ShapeDtypeStruct((Bp, 1), jnp.float32),
        grid_spec=grid_spec,
        compiler_params=pltpu.CompilerParams(
            dimension_semantics=("parallel",),      # v7x: shard batch across TCs
            vmem_limit_bytes=vmem_limit),
    )(win, rr, w_conv, b_conv, m_fold, w_head, b_head, w_c01, b_all)

    return score[:B, 0]


def deepconn_reference(params, word_emb, u_ids, i_ids, u_rr, i_rr,
                       *, bf16_windows=True):
    """Pure-JAX mirror of the PyTorch DeepConn.forward (pdf='Gumbel', dropout=id).

    bf16_windows=True applies the same bf16 quantization of the embedding /
    Conv2d-weight streams the kernel uses (accumulation stays f32), so the
    comparison isolates kernel-structure errors.
    """
    def maybe_bf16(x):
        return x.astype(jnp.bfloat16).astype(jnp.float32) if bf16_windows else x

    with jax.default_matmul_precision("highest"):
        def review_feature(ids, wc, bc, wf, bf):
            x = maybe_bf16(jnp.take(word_emb, ids, axis=0))           # (B, L, E)
            L = x.shape[1]
            xp = jnp.pad(x, ((0, 0), (1, 1), (0, 0)))
            win = jnp.stack([xp[:, k:k + L, :] for k in range(3)], axis=2)
            conv = jnp.einsum("btke,fke->btf", win, maybe_bf16(wc[:, 0])) + bc
            conv = jnp.maximum(conv, 0.0)
            pooled = jnp.max(conv, axis=1)                            # (B, F)
            return pooled @ wf.T + bf                                 # (B, n)

        fu = review_feature(u_ids, params["uconv_w"], params["uconv_b"],
                            params["ufea_w"], params["ufea_b"])
        fi = review_feature(i_ids, params["iconv_w"], params["iconv_b"],
                            params["ifea_w"], params["ifea_b"])
        feature = jnp.concatenate([fu, fi], axis=-1)                  # (B, 2n)
        feat5 = feature @ params["lin_w"].T + params["lin_b"]         # (B, 5)

        rating = jnp.arange(1.0, 6.0, dtype=jnp.float32)

        def gumbel_pdf(rr):
            mean = rr @ params["mean_w"].T + params["mean_b"]
            var = (rr @ params["var_w"].T + params["var_b"]) ** 2 + 0.2
            z = jnp.exp((rating - mean) / var)
            return z * jnp.exp(-z) / var

        out1 = gumbel_pdf(u_rr)
        out2 = gumbel_pdf(i_rr)
        cat = jnp.stack([out1, out2, feat5], axis=1)                  # (B, 3, 5)
        conv1 = jnp.einsum("bki,oik->bo", cat, params["c1d_w"]) + params["c1d_b"]
        urr = u_rr @ params["mlp1_w"].T + params["mlp1_b"]
        irr = i_rr @ params["mlp2_w"].T + params["mlp2_b"]
        return jnp.sum(conv1 * urr * irr, axis=-1)                    # (B,)


if __name__ == "__main__":
    # Small shapes implied by the module: batch B=32 (two 16-row grid tiles),
    # review_len L=16, word_embedding E=32, num_filters F=16, args.n=8, vocab V=64.
    B, L, E, F, N, V = 32, 16, 32, 16, 8, 64

    key = jax.random.PRNGKey(0)
    ks = jax.random.split(key, 24)
    uni = lambda k, shape: jax.random.uniform(k, shape, jnp.float32, -0.5, 0.5)

    params = {
        "uconv_w": uni(ks[0], (F, 1, 3, E)), "uconv_b": uni(ks[1], (F,)),
        "iconv_w": uni(ks[2], (F, 1, 3, E)), "iconv_b": uni(ks[3], (F,)),
        "ufea_w": uni(ks[4], (N, F)), "ufea_b": uni(ks[5], (N,)),
        "ifea_w": uni(ks[6], (N, F)), "ifea_b": uni(ks[7], (N,)),
        "lin_w": uni(ks[8], (5, 2 * N)), "lin_b": uni(ks[9], (5,)),
        "mean_w": uni(ks[10], (5, 5)), "mean_b": uni(ks[11], (5,)),
        "var_w": uni(ks[12], (5, 5)), "var_b": uni(ks[13], (5,)),
        "c1d_w": uni(ks[14], (5, 5, 3)), "c1d_b": uni(ks[15], (5,)),
        "mlp1_w": uni(ks[16], (5, 5)), "mlp1_b": uni(ks[17], (5,)),
        "mlp2_w": uni(ks[18], (5, 5)), "mlp2_b": uni(ks[19], (5,)),
    }

    word_emb = jax.random.normal(ks[20], (V, E), jnp.float32)   # frozen embeddings
    u_ids = jax.random.randint(ks[21], (B, L), 0, V)
    i_ids = jax.random.randint(ks[22], (B, L), 0, V)
    kr1, kr2 = jax.random.split(ks[23])
    u_rr = jax.nn.softmax(jax.random.normal(kr1, (B, 5), jnp.float32), axis=-1)
    i_rr = jax.nn.softmax(jax.random.normal(kr2, (B, 5), jnp.float32), axis=-1)

    score = deepconn_forward(params, word_emb, u_ids, i_ids, u_rr, i_rr,
                             block_b=16)
    score = jax.block_until_ready(score)
    assert score.shape == (B,), score.shape

    ref = deepconn_reference(params, word_emb, u_ids, i_ids, u_rr, i_rr)
    assert jnp.allclose(score, ref, atol=2e-3, rtol=2e-3), (score, ref)

    print("KERNEL_OK")
</pallas_src>

<mosaic_0001>
module attributes {stable_mosaic.version = 11 : i64} {
  func.func @deepconn_kernel(%arg0: i32, %arg1: memref<2x18x16x32xbf16, #tpu.memory_space<vmem>>, %arg2: memref<2x16x5xf32, #tpu.memory_space<vmem>>, %arg3: memref<3x32x32xbf16, #tpu.memory_space<vmem>>, %arg4: memref<1x32xf32, #tpu.memory_space<vmem>>, %arg5: memref<2x32x5xf32, #tpu.memory_space<vmem>>, %arg6: memref<2x5x15xf32, #tpu.memory_space<vmem>>, %arg7: memref<2x1x15xf32, #tpu.memory_space<vmem>>, %arg8: memref<2x5x5xf32, #tpu.memory_space<vmem>>, %arg9: memref<1x5xf32, #tpu.memory_space<vmem>>, %arg10: memref<16x1xf32, #tpu.memory_space<vmem>>) attributes {dimension_semantics = [#tpu.dimension_semantics<parallel>], iteration_bounds = array<i64: 2>, scalar_prefetch = 0 : i64, scratch_operands = 0 : i64, tpu.core_type = #tpu.core_type<tc>, window_params = [{transform_indices = @transform_0, window_bounds = array<i64: 2, 18, 16, 32>}, {transform_indices = @transform_1, window_bounds = array<i64: 2, 16, 5>}, {pipeline_mode = #tpu.pipeline_mode<synchronous>, transform_indices = @transform_2, window_bounds = array<i64: 3, 32, 32>}, {pipeline_mode = #tpu.pipeline_mode<synchronous>, transform_indices = @transform_3, window_bounds = array<i64: 1, 32>}, {pipeline_mode = #tpu.pipeline_mode<synchronous>, transform_indices = @transform_4, window_bounds = array<i64: 2, 32, 5>}, {pipeline_mode = #tpu.pipeline_mode<synchronous>, transform_indices = @transform_5, window_bounds = array<i64: 2, 5, 15>}, {pipeline_mode = #tpu.pipeline_mode<synchronous>, transform_indices = @transform_6, window_bounds = array<i64: 2, 1, 15>}, {pipeline_mode = #tpu.pipeline_mode<synchronous>, transform_indices = @transform_7, window_bounds = array<i64: 2, 5, 5>}, {pipeline_mode = #tpu.pipeline_mode<synchronous>, transform_indices = @transform_8, window_bounds = array<i64: 1, 5>}, {transform_indices = @transform_9, window_bounds = array<i64: 16, 1>}]} {
    %cst = arith.constant 0.000000e+00 : f32
    %0 = vector.broadcast %cst : f32 to vector<512x32xf32>
    %c0 = arith.constant 0 : index
    %c0_0 = arith.constant 0 : index
    %c0_1 = arith.constant 0 : index
    %c0_2 = arith.constant 0 : index
    %1 = vector.load %arg1[%c0, %c0_0, %c0_1, %c0_2] : memref<2x18x16x32xbf16, #tpu.memory_space<vmem>>, vector<2x16x16x32xbf16>
    %2 = vector.shape_cast %1 : vector<2x16x16x32xbf16> to vector<512x32xbf16>
    %c0_3 = arith.constant 0 : index
    %c0_4 = arith.constant 0 : index
    %c0_5 = arith.constant 0 : index
    %3 = vector.load %arg3[%c0_3, %c0_4, %c0_5] : memref<3x32x32xbf16, #tpu.memory_space<vmem>>, vector<1x32x32xbf16>
    %4 = vector.shape_cast %3 : vector<1x32x32xbf16> to vector<32x32xbf16>
    %cst_6 = arith.constant dense<0.000000e+00> : vector<512x32xf32>
    %5 = tpu.matmul %2, %4, %cst_6 {dimension_numbers = #tpu.dot_dimension_numbers<[1], [0], [0], [1], [0, 0, 1, 1], [], []>} : vector<512x32xbf16>, vector<32x32xbf16>, vector<512x32xf32> -> vector<512x32xf32>
    %6 = arith.addf %0, %5 : vector<512x32xf32>
    %c0_7 = arith.constant 0 : index
    %c1 = arith.constant 1 : index
    %c0_8 = arith.constant 0 : index
    %c0_9 = arith.constant 0 : index
    %7 = vector.load %arg1[%c0_7, %c1, %c0_8, %c0_9] : memref<2x18x16x32xbf16, #tpu.memory_space<vmem>>, vector<2x16x16x32xbf16>
    %8 = vector.shape_cast %7 : vector<2x16x16x32xbf16> to vector<512x32xbf16>
    %c1_10 = arith.constant 1 : index
    %c0_11 = arith.constant 0 : index
    %c0_12 = arith.constant 0 : index
    %9 = vector.load %arg3[%c1_10, %c0_11, %c0_12] : memref<3x32x32xbf16, #tpu.memory_space<vmem>>, vector<1x32x32xbf16>
    %10 = vector.shape_cast %9 : vector<1x32x32xbf16> to vector<32x32xbf16>
    %cst_13 = arith.constant dense<0.000000e+00> : vector<512x32xf32>
    %11 = tpu.matmul %8, %10, %cst_13 {dimension_numbers = #tpu.dot_dimension_numbers<[1], [0], [0], [1], [0, 0, 1, 1], [], []>} : vector<512x32xbf16>, vector<32x32xbf16>, vector<512x32xf32> -> vector<512x32xf32>
    %12 = arith.addf %6, %11 : vector<512x32xf32>
    %c0_14 = arith.constant 0 : index
    %c2 = arith.constant 2 : index
    %c0_15 = arith.constant 0 : index
    %c0_16 = arith.constant 0 : index
    %13 = vector.load %arg1[%c0_14, %c2, %c0_15, %c0_16] : memref<2x18x16x32xbf16, #tpu.memory_space<vmem>>, vector<2x16x16x32xbf16>
    %14 = vector.shape_cast %13 : vector<2x16x16x32xbf16> to vector<512x32xbf16>
    %c2_17 = arith.constant 2 : index
    %c0_18 = arith.constant 0 : index
    %c0_19 = arith.constant 0 : index
    %15 = vector.load %arg3[%c2_17, %c0_18, %c0_19] : memref<3x32x32xbf16, #tpu.memory_space<vmem>>, vector<1x32x32xbf16>
    %16 = vector.shape_cast %15 : vector<1x32x32xbf16> to vector<32x32xbf16>
    %cst_20 = arith.constant dense<0.000000e+00> : vector<512x32xf32>
    %17 = tpu.matmul %14, %16, %cst_20 {dimension_numbers = #tpu.dot_dimension_numbers<[1], [0], [0], [1], [0, 0, 1, 1], [], []>} : vector<512x32xbf16>, vector<32x32xbf16>, vector<512x32xf32> -> vector<512x32xf32>
    %18 = arith.addf %12, %17 : vector<512x32xf32>
    %c0_21 = arith.constant 0 : index
    %c0_22 = arith.constant 0 : index
    %19 = vector.load %arg4[%c0_21, %c0_22] : memref<1x32xf32, #tpu.memory_space<vmem>>, vector<1x32xf32>
    %20 = vector.broadcast %19 : vector<1x32xf32> to vector<512x32xf32>
    %21 = arith.addf %18, %20 : vector<512x32xf32>
    %cst_23 = arith.constant 0.000000e+00 : f32
    %22 = vector.broadcast %cst_23 : f32 to vector<512x32xf32>
    %23 = arith.maximumf %21, %22 : vector<512x32xf32>
    %24 = vector.shape_cast %23 : vector<512x32xf32> to vector<2x16x16x32xf32>
    %cst_24 = arith.constant dense<0xFF800000> : vector<2x16x32xf32>
    %25 = vector.multi_reduction <maximumf>, %24, %cst_24 [1] : vector<2x16x16x32xf32> to vector<2x16x32xf32>
    %26 = tpu.iota {dimensions = array<i32: 1>} : vector<1x5xi32>
    %c1_i32 = arith.constant 1 : i32
    %27 = vector.broadcast %c1_i32 : i32 to vector<1x5xi32>
    %28 = arith.addi %26, %27 : vector<1x5xi32>
    %29 = arith.sitofp %28 : vector<1x5xi32> to vector<1x5xf32>
    %c0_25 = arith.constant 0 : index
    %c0_26 = arith.constant 0 : index
    %c0_27 = arith.constant 0 : index
    %30 = vector.load %arg2[%c0_25, %c0_26, %c0_27] : memref<2x16x5xf32, #tpu.memory_space<vmem>>, vector<1x16x5xf32>
    %31 = vector.shape_cast %30 : vector<1x16x5xf32> to vector<16x5xf32>
    %c0_28 = arith.constant 0 : index
    %c0_29 = arith.constant 0 : index
    %c0_30 = arith.constant 0 : index
    %32 = vector.load %arg6[%c0_28, %c0_29, %c0_30] : memref<2x5x15xf32, #tpu.memory_space<vmem>>, vector<1x5x15xf32>
    %33 = vector.shape_cast %32 : vector<1x5x15xf32> to vector<5x15xf32>
    %cst_31 = arith.constant dense<0.000000e+00> : vector<16x15xf32>
    %34 = tpu.matmul %31, %33, %cst_31 {dimension_numbers = #tpu.dot_dimension_numbers<[1], [0], [0], [1], [0, 0, 1, 1], [], []>} : vector<16x5xf32>, vector<5x15xf32>, vector<16x15xf32> -> vector<16x15xf32>
    %c0_32 = arith.constant 0 : index
    %c0_33 = arith.constant 0 : index
    %c0_34 = arith.constant 0 : index
    %35 = vector.load %arg7[%c0_32, %c0_33, %c0_34] : memref<2x1x15xf32, #tpu.memory_space<vmem>>, vector<1x1x15xf32>
    %36 = vector.shape_cast %35 : vector<1x1x15xf32> to vector<1x15xf32>
    %37 = vector.broadcast %36 : vector<1x15xf32> to vector<16x15xf32>
    %38 = arith.addf %34, %37 : vector<16x15xf32>
    %39 = vector.extract_strided_slice %38 {offsets = [0, 0], sizes = [16, 5], strides = [1, 1]} : vector<16x15xf32> to vector<16x5xf32>
    %40 = vector.extract_strided_slice %38 {offsets = [0, 5], sizes = [16, 5], strides = [1, 1]} : vector<16x15xf32> to vector<16x5xf32>
    %41 = vector.extract_strided_slice %38 {offsets = [0, 10], sizes = [16, 5], strides = [1, 1]} : vector<16x15xf32> to vector<16x5xf32>
    %42 = arith.mulf %40, %40 : vector<16x5xf32>
    %cst_35 = arith.constant 2.000000e-01 : f32
    %43 = vector.broadcast %cst_35 : f32 to vector<16x5xf32>
    %44 = arith.addf %42, %43 : vector<16x5xf32>
    %45 = vector.broadcast %29 : vector<1x5xf32> to vector<16x5xf32>
    %46 = arith.subf %45, %39 : vector<16x5xf32>
    %47 = arith.divf %46, %44 : vector<16x5xf32>
    %48 = math.exp %47 : vector<16x5xf32>
    %cst_36 = arith.constant 0.000000e+00 : f32
    %49 = vector.broadcast %cst_36 : f32 to vector<16x5xf32>
    %50 = arith.subf %49, %48 : vector<16x5xf32>
    %51 = math.exp %50 : vector<16x5xf32>
    %52 = arith.mulf %48, %51 : vector<16x5xf32>
    %53 = arith.divf %52, %44 : vector<16x5xf32>
    %c1_37 = arith.constant 1 : index
    %c0_38 = arith.constant 0 : index
    %c0_39 = arith.constant 0 : index
    %54 = vector.load %arg2[%c1_37, %c0_38, %c0_39] : memref<2x16x5xf32, #tpu.memory_space<vmem>>, vector<1x16x5xf32>
    %55 = vector.shape_cast %54 : vector<1x16x5xf32> to vector<16x5xf32>
    %c1_40 = arith.constant 1 : index
    %c0_41 = arith.constant 0 : index
    %c0_42 = arith.constant 0 : index
    %56 = vector.load %arg6[%c1_40, %c0_41, %c0_42] : memref<2x5x15xf32, #tpu.memory_space<vmem>>, vector<1x5x15xf32>
    %57 = vector.shape_cast %56 : vector<1x5x15xf32> to vector<5x15xf32>
    %cst_43 = arith.constant dense<0.000000e+00> : vector<16x15xf32>
    %58 = tpu.matmul %55, %57, %cst_43 {dimension_numbers = #tpu.dot_dimension_numbers<[1], [0], [0], [1], [0, 0, 1, 1], [], []>} : vector<16x5xf32>, vector<5x15xf32>, vector<16x15xf32> -> vector<16x15xf32>
    %c1_44 = arith.constant 1 : index
    %c0_45 = arith.constant 0 : index
    %c0_46 = arith.constant 0 : index
    %59 = vector.load %arg7[%c1_44, %c0_45, %c0_46] : memref<2x1x15xf32, #tpu.memory_space<vmem>>, vector<1x1x15xf32>
    %60 = vector.shape_cast %59 : vector<1x1x15xf32> to vector<1x15xf32>
    %61 = vector.broadcast %60 : vector<1x15xf32> to vector<16x15xf32>
    %62 = arith.addf %58, %61 : vector<16x15xf32>
    %63 = vector.extract_strided_slice %62 {offsets = [0, 0], sizes = [16, 5], strides = [1, 1]} : vector<16x15xf32> to vector<16x5xf32>
    %64 = vector.extract_strided_slice %62 {offsets = [0, 5], sizes = [16, 5], strides = [1, 1]} : vector<16x15xf32> to vector<16x5xf32>
    %65 = vector.extract_strided_slice %62 {offsets = [0, 10], sizes = [16, 5], strides = [1, 1]} : vector<16x15xf32> to vector<16x5xf32>
    %66 = arith.mulf %64, %64 : vector<16x5xf32>
    %cst_47 = arith.constant 2.000000e-01 : f32
    %67 = vector.broadcast %cst_47 : f32 to vector<16x5xf32>
    %68 = arith.addf %66, %67 : vector<16x5xf32>
    %69 = vector.broadcast %29 : vector<1x5xf32> to vector<16x5xf32>
    %70 = arith.subf %69, %63 : vector<16x5xf32>
    %71 = arith.divf %70, %68 : vector<16x5xf32>
    %72 = math.exp %71 : vector<16x5xf32>
    %cst_48 = arith.constant 0.000000e+00 : f32
    %73 = vector.broadcast %cst_48 : f32 to vector<16x5xf32>
    %74 = arith.subf %73, %72 : vector<16x5xf32>
    %75 = math.exp %74 : vector<16x5xf32>
    %76 = arith.mulf %72, %75 : vector<16x5xf32>
    %77 = arith.divf %76, %68 : vector<16x5xf32>
    %c0_49 = arith.constant 0 : index
    %c0_50 = arith.constant 0 : index
    %c0_51 = arith.constant 0 : index
    %78 = vector.load %arg8[%c0_49, %c0_50, %c0_51] : memref<2x5x5xf32, #tpu.memory_space<vmem>>, vector<1x5x5xf32>
    %79 = vector.shape_cast %78 : vector<1x5x5xf32> to vector<5x5xf32>
    %cst_52 = arith.constant dense<0.000000e+00> : vector<16x5xf32>
    %80 = tpu.matmul %53, %79, %cst_52 {dimension_numbers = #tpu.dot_dimension_numbers<[1], [0], [0], [1], [0, 0, 1, 1], [], []>} : vector<16x5xf32>, vector<5x5xf32>, vector<16x5xf32> -> vector<16x5xf32>
    %c1_53 = arith.constant 1 : index
    %c0_54 = arith.constant 0 : index
    %c0_55 = arith.constant 0 : index
    %81 = vector.load %arg8[%c1_53, %c0_54, %c0_55] : memref<2x5x5xf32, #tpu.memory_space<vmem>>, vector<1x5x5xf32>
    %82 = vector.shape_cast %81 : vector<1x5x5xf32> to vector<5x5xf32>
    %cst_56 = arith.constant dense<0.000000e+00> : vector<16x5xf32>
    %83 = tpu.matmul %77, %82, %cst_56 {dimension_numbers = #tpu.dot_dimension_numbers<[1], [0], [0], [1], [0, 0, 1, 1], [], []>} : vector<16x5xf32>, vector<5x5xf32>, vector<16x5xf32> -> vector<16x5xf32>
    %84 = arith.addf %80, %83 : vector<16x5xf32>
    %85 = vector.extract_strided_slice %25 {offsets = [0, 0, 0], sizes = [1, 16, 32], strides = [1, 1, 1]} : vector<2x16x32xf32> to vector<1x16x32xf32>
    %86 = vector.shape_cast %85 : vector<1x16x32xf32> to vector<16x32xf32>
    %c0_57 = arith.constant 0 : index
    %c0_58 = arith.constant 0 : index
    %c0_59 = arith.constant 0 : index
    %87 = vector.load %arg5[%c0_57, %c0_58, %c0_59] : memref<2x32x5xf32, #tpu.memory_space<vmem>>, vector<1x32x5xf32>
    %88 = vector.shape_cast %87 : vector<1x32x5xf32> to vector<32x5xf32>
    %cst_60 = arith.constant dense<0.000000e+00> : vector<16x5xf32>
    %89 = tpu.matmul %86, %88, %cst_60 {dimension_numbers = #tpu.dot_dimension_numbers<[1], [0], [0], [1], [0, 0, 1, 1], [], []>} : vector<16x32xf32>, vector<32x5xf32>, vector<16x5xf32> -> vector<16x5xf32>
    %90 = arith.addf %84, %89 : vector<16x5xf32>
    %91 = vector.extract_strided_slice %25 {offsets = [1, 0, 0], sizes = [1, 16, 32], strides = [1, 1, 1]} : vector<2x16x32xf32> to vector<1x16x32xf32>
    %92 = vector.shape_cast %91 : vector<1x16x32xf32> to vector<16x32xf32>
    %c1_61 = arith.constant 1 : index
    %c0_62 = arith.constant 0 : index
    %c0_63 = arith.constant 0 : index
    %93 = vector.load %arg5[%c1_61, %c0_62, %c0_63] : memref<2x32x5xf32, #tpu.memory_space<vmem>>, vector<1x32x5xf32>
    %94 = vector.shape_cast %93 : vector<1x32x5xf32> to vector<32x5xf32>
    %cst_64 = arith.constant dense<0.000000e+00> : vector<16x5xf32>
    %95 = tpu.matmul %92, %94, %cst_64 {dimension_numbers = #tpu.dot_dimension_numbers<[1], [0], [0], [1], [0, 0, 1, 1], [], []>} : vector<16x32xf32>, vector<32x5xf32>, vector<16x5xf32> -> vector<16x5xf32>
    %96 = arith.addf %90, %95 : vector<16x5xf32>
    %c0_65 = arith.constant 0 : index
    %c0_66 = arith.constant 0 : index
    %97 = vector.load %arg9[%c0_65, %c0_66] : memref<1x5xf32, #tpu.memory_space<vmem>>, vector<1x5xf32>
    %98 = vector.broadcast %97 : vector<1x5xf32> to vector<16x5xf32>
    %99 = arith.addf %96, %98 : vector<16x5xf32>
    %100 = arith.mulf %99, %41 : vector<16x5xf32>
    %101 = arith.mulf %100, %65 : vector<16x5xf32>
    %cst_67 = arith.constant dense<0.000000e+00> : vector<16xf32>
    %102 = vector.multi_reduction <add>, %101, %cst_67 [1] : vector<16x5xf32> to vector<16xf32>
    %103 = vector.shape_cast %102 : vector<16xf32> to vector<16x1xf32>
    %c0_68 = arith.constant 0 : index
    %c0_69 = arith.constant 0 : index
    %104 = vector.load %arg10[%c0_68, %c0_69] : memref<16x1xf32, #tpu.memory_space<vmem>>, vector<16x1xf32>
    tpu.vector_store %arg10[%c0_68, %c0_69], %103 {strides = array<i32>} : memref<16x1xf32, #tpu.memory_space<vmem>>, vector<16x1xf32>,
    return
  }
  func.func @transform_0(%arg0: i32) -> (i32, i32, i32, i32) {
    %c0_i32 = arith.constant 0 : i32
    %c0_i32_0 = arith.constant 0 : i32
    %c0_i32_1 = arith.constant 0 : i32
    %c0_i32_2 = arith.constant 0 : i32
    return %c0_i32, %c0_i32_0, %arg0, %c0_i32_1 : i32, i32, i32, i32
  }
  func.func @transform_1(%arg0: i32) -> (i32, i32, i32) {
    %c0_i32 = arith.constant 0 : i32
    %c0_i32_0 = arith.constant 0 : i32
    %c0_i32_1 = arith.constant 0 : i32
    return %c0_i32, %arg0, %c0_i32_0 : i32, i32, i32
  }
  func.func @transform_2(%arg0: i32) -> (i32, i32, i32) {
    %c0_i32 = arith.constant 0 : i32
    %c0_i32_0 = arith.constant 0 : i32
    %c0_i32_1 = arith.constant 0 : i32
    %c0_i32_2 = arith.constant 0 : i32
    return %c0_i32, %c0_i32_0, %c0_i32_1 : i32, i32, i32
  }
  func.func @transform_3(%arg0: i32) -> (i32, i32) {
    %c0_i32 = arith.constant 0 : i32
    %c0_i32_0 = arith.constant 0 : i32
    %c0_i32_1 = arith.constant 0 : i32
    return %c0_i32, %c0_i32_0 : i32, i32
  }
  func.func @transform_4(%arg0: i32) -> (i32, i32, i32) {
    %c0_i32 = arith.constant 0 : i32
    %c0_i32_0 = arith.constant 0 : i32
    %c0_i32_1 = arith.constant 0 : i32
    %c0_i32_2 = arith.constant 0 : i32
    return %c0_i32, %c0_i32_0, %c0_i32_1 : i32, i32, i32
  }
  func.func @transform_5(%arg0: i32) -> (i32, i32, i32) {
    %c0_i32 = arith.constant 0 : i32
    %c0_i32_0 = arith.constant 0 : i32
    %c0_i32_1 = arith.constant 0 : i32
    %c0_i32_2 = arith.constant 0 : i32
    return %c0_i32, %c0_i32_0, %c0_i32_1 : i32, i32, i32
  }
  func.func @transform_6(%arg0: i32) -> (i32, i32, i32) {
    %c0_i32 = arith.constant 0 : i32
    %c0_i32_0 = arith.constant 0 : i32
    %c0_i32_1 = arith.constant 0 : i32
    %c0_i32_2 = arith.constant 0 : i32
    return %c0_i32, %c0_i32_0, %c0_i32_1 : i32, i32, i32
  }
  func.func @transform_7(%arg0: i32) -> (i32, i32, i32) {
    %c0_i32 = arith.constant 0 : i32
    %c0_i32_0 = arith.constant 0 : i32
    %c0_i32_1 = arith.constant 0 : i32
    %c0_i32_2 = arith.constant 0 : i32
    return %c0_i32, %c0_i32_0, %c0_i32_1 : i32, i32, i32
  }
  func.func @transform_8(%arg0: i32) -> (i32, i32) {
    %c0_i32 = arith.constant 0 : i32
    %c0_i32_0 = arith.constant 0 : i32
    %c0_i32_1 = arith.constant 0 : i32
    return %c0_i32, %c0_i32_0 : i32, i32
  }
  func.func @transform_9(%arg0: i32) -> (i32, i32) {
    %c0_i32 = arith.constant 0 : i32
    %c0_i32_0 = arith.constant 0 : i32
    return %arg0, %c0_i32 : i32, i32
  }
}

</mosaic_0001>

<bundles_post_ra>
// kernel: deepconn_forward.1
= control target key start
LH: loop header
LB: loop body
LE: loop exit
PB: predicated region body
PF: predicated region fallthrough
CT: control target
= control target key end

     0   :  { %s3952_s30 = smov 0   ;;  %s3954_s10 = smov 0   ;;  %s4729_s0 = inlined_call_operand.vmem [shape: bf16[2,18,32,32], index: 0, kind: input, shape index: {}]   ;;  %s4730_s1 = inlined_call_operand.vmem [shape: f32[2,32,5], index: 1, kind: input, shape index: {}]   ;;  %s4731_s2 = inlined_call_operand.vmem [shape: bf16[3,32,32], index: 2, kind: input, shape index: {}]   ;;  %s4732_s3 = inlined_call_operand.vmem [shape: f32[1,32], index: 3, kind: input, shape index: {}]   ;;  %s4733_s4 = inlined_call_operand.vmem [shape: f32[2,32,5], index: 4, kind: input, shape index: {}]   ;;  %s4734_s5 = inlined_call_operand.vmem [shape: f32[2,5,15], index: 5, kind: input, shape index: {}]   ;;  %s4735_s6 = inlined_call_operand.vmem [shape: f32[2,1,15], index: 6, kind: input, shape index: {}]   ;;  %s4736_s7 = inlined_call_operand.vmem [shape: f32[2,5,5], index: 7, kind: input, shape index: {}]   ;;  %s4737_s8 = inlined_call_operand.vmem [shape: f32[1,5], index: 8, kind: input, shape index: {}]   ;;  %s4738_s9 = inlined_call_operand.vmem [shape: f32[32,1], index: 9, kind: output, shape index: {}]  }
   0x1   :  { %s3956_s11 = smov 0  }
   0x2 LB: > { %s3029_s12 = sadd.s32 4294967295, %s3898_s11   ;;  %s3969_s13 = sadd.s32 1, %s3898_s11   ;;  %s3898_s11 = sphi %s3956_s11, %s4776_s11   ;;  %s3894_s10 = sphi %s3954_s10, %s4775_s10   ;;  %s3890_s30 = sphi %s3952_s30, %s4774_s30  }
   0x3   : > { %s23_s14 = ssub.s32 %s3898_s11, %s3969_s13  ;;  %s26_s15 = sadd.s32 1, %s3894_s10 }
   0x4   : > { %p24_p0 = scmp.eq.s32.totalorder %s23_s14, 0  ;;  %p33_p1 = scmp.ne.s32.totalorder %s3894_s10, %s3890_s30 }
   0x5   : > { %p34_p2 = scmp.eq.s32.totalorder %s3898_s11, 0  ;;  %p3032_p4 = scmp.ge.s32.totalorder %s3898_s11, 2 }
   0x6   : > { %s3978_s16 = scalar_select %p24_p0, %s3894_s10, %s26_s15  }
   0x7   : > { %p3980_p3 = por %p34_p2, %p33_p1  ;;  %279 = sbr.rel (%p3032_p4) target bundleno = 60 (0x3c), region = 44 }
   0xc   : > { %282 = sbr.rel (!%p3980_p3) target bundleno = 52 (0x34), region = 48  ;;  %s284_s18 = sand.u32 (%p3980_p3), 1, %s3894_s10  }
   0xd   : > { %s3709_s19 = sshll.u32 (%p3980_p3), %s3898_s11, 3  ;;  %s3819_s20 = smul.u32 (%p3980_p3), 288, %s284_s18 }
   0xe   : > { %s3992_s23 = scalar_lea.vmem (%p3980_p3), %s4729_s0, %s3709_s19 }
   0xf   : > { %v306_v0 = vld [vmem:[%s3992_s23] sm:$0xff] (%p3980_p3)   ;;  %v310_v1 = vld [vmem:[%s3992_s23 + $0x10] sm:$0xff] (%p3980_p3)   ;;  %s3997_s24 = scalar_lea.vmem (%p3980_p3), [#allocation2], %s3819_s20 }
  0x10   : > { %v314_v2 = vld [vmem:[%s3992_s23 + $0x20] sm:$0xff] (%p3980_p3)   ;;  %307 = vst [vmem:[%s3997_s24] sm:$0xff] (%p3980_p3), %v306_v0   ;;  %v318_v3 = vld [vmem:[%s3992_s23 + $0x30] sm:$0xff] (%p3980_p3)  }
  0x11   : > { %311 = vst [vmem:[%s3997_s24 + $0x8] sm:$0xff] %v310_v1   ;;  %v322_v4 = vld [vmem:[%s3992_s23 + $0x40] sm:$0xff]   ;;  %v326_v5 = vld [vmem:[%s3992_s23 + $0x50] sm:$0xff]  }
  0x12   : > { %315 = vst [vmem:[%s3997_s24 + $0x10] sm:$0xff] %v314_v2   ;;  %v330_v6 = vld [vmem:[%s3992_s23 + $0x60] sm:$0xff]   ;;  %v334_v7 = vld [vmem:[%s3992_s23 + $0x70] sm:$0xff]  }
  0x13   : > { %319 = vst [vmem:[%s3997_s24 + $0x18] sm:$0xff] %v318_v3   ;;  %v338_v8 = vld [vmem:[%s3992_s23 + $0x80] sm:$0xff]   ;;  %v342_v9 = vld [vmem:[%s3992_s23 + $0x90] sm:$0xff]  }
  0x14   : > { %323 = vst [vmem:[%s3997_s24 + $0x20] sm:$0xff] %v322_v4   ;;  %v346_v10 = vld [vmem:[%s3992_s23 + $0xa0] sm:$0xff]   ;;  %v350_v11 = vld [vmem:[%s3992_s23 + $0xb0] sm:$0xff]  }
  0x15   : > { %327 = vst [vmem:[%s3997_s24 + $0x28] sm:$0xff] %v326_v5   ;;  %v354_v12 = vld [vmem:[%s3992_s23 + $0xc0] sm:$0xff]   ;;  %v358_v13 = vld [vmem:[%s3992_s23 + $0xd0] sm:$0xff]  }
  0x16   : > { %331 = vst [vmem:[%s3997_s24 + $0x30] sm:$0xff] %v330_v6   ;;  %v362_v14 = vld [vmem:[%s3992_s23 + $0xe0] sm:$0xff]   ;;  %v366_v15 = vld [vmem:[%s3992_s23 + $0xf0] sm:$0xff]  }
  0x17   : > { %335 = vst [vmem:[%s3997_s24 + $0x38] sm:$0xff] %v334_v7   ;;  %v370_v16 = vld [vmem:[%s3992_s23 + $0x100] sm:$0xff]   ;;  %v374_v17 = vld [vmem:[%s3992_s23 + $0x110] sm:$0xff]  }
  0x18   : > { %339 = vst [vmem:[%s3997_s24 + $0x40] sm:$0xff] %v338_v8   ;;  %v378_v18 = vld [vmem:[%s3992_s23 + $0x120] sm:$0xff]   ;;  %v382_v19 = vld [vmem:[%s3992_s23 + $0x130] sm:$0xff]  }
  0x19   : > { %343 = vst [vmem:[%s3997_s24 + $0x48] sm:$0xff] %v342_v9   ;;  %v386_v20 = vld [vmem:[%s3992_s23 + $0x140] sm:$0xff]   ;;  %v390_v21 = vld [vmem:[%s3992_s23 + $0x150] sm:$0xff]  }
  0x1a   : > { %347 = vst [vmem:[%s3997_s24 + $0x50] sm:$0xff] %v346_v10   ;;  %v394_v22 = vld [vmem:[%s3992_s23 + $0x160] sm:$0xff]   ;;  %v398_v23 = vld [vmem:[%s3992_s23 + $0x170] sm:$0xff]  }
  0x1b   : > { %351 = vst [vmem:[%s3997_s24 + $0x58] sm:$0xff] %v350_v11   ;;  %v402_v24 = vld [vmem:[%s3992_s23 + $0x180] sm:$0xff]   ;;  %v406_v25 = vld [vmem:[%s3992_s23 + $0x190] sm:$0xff]  }
  0x1c   : > { %355 = vst [vmem:[%s3997_s24 + $0x60] sm:$0xff] %v354_v12   ;;  %v410_v26 = vld [vmem:[%s3992_s23 + $0x1a0] sm:$0xff]   ;;  %v414_v27 = vld [vmem:[%s3992_s23 + $0x1b0] sm:$0xff]  }
  0x1d   : > { %359 = vst [vmem:[%s3997_s24 + $0x68] sm:$0xff] %v358_v13   ;;  %v418_v28 = vld [vmem:[%s3992_s23 + $0x1c0] sm:$0xff]   ;;  %v422_v29 = vld [vmem:[%s3992_s23 + $0x1d0] sm:$0xff]  }
  0x1e   : > { %363 = vst [vmem:[%s3997_s24 + $0x70] sm:$0xff] %v362_v14   ;;  %v426_v30 = vld [vmem:[%s3992_s23 + $0x1e0] sm:$0xff]   ;;  %v430_v31 = vld [vmem:[%s3992_s23 + $0x1f0] sm:$0xff]  }
  0x1f   : > { %367 = vst [vmem:[%s3997_s24 + $0x78] sm:$0xff] %v366_v15   ;;  %v434_v32 = vld [vmem:[%s3992_s23 + $0x200] sm:$0xff]   ;;  %v438_v33 = vld [vmem:[%s3992_s23 + $0x210] sm:$0xff]  }
  0x20   : > { %371 = vst [vmem:[%s3997_s24 + $0x80] sm:$0xff] %v370_v16   ;;  %v442_v34 = vld [vmem:[%s3992_s23 + $0x220] sm:$0xff]   ;;  %v446_v35 = vld [vmem:[%s3992_s23 + $0x230] sm:$0xff]  }
  0x21   : > { %375 = vst [vmem:[%s3997_s24 + $0x88] sm:$0xff] %v374_v17  }
  0x22   : > { %379 = vst [vmem:[%s3997_s24 + $0x90] sm:$0xff] %v378_v18  }
  0x23   : > { %383 = vst [vmem:[%s3997_s24 + $0x98] sm:$0xff] %v382_v19  }
  0x24   : > { %387 = vst [vmem:[%s3997_s24 + $0xa0] sm:$0xff] %v386_v20  }
  0x25   : > { %391 = vst [vmem:[%s3997_s24 + $0xa8] sm:$0xff] %v390_v21  }
  0x26   : > { %395 = vst [vmem:[%s3997_s24 + $0xb0] sm:$0xff] %v394_v22  }
  0x27   : > { %399 = vst [vmem:[%s3997_s24 + $0xb8] sm:$0xff] %v398_v23  }
  0x28   : > { %403 = vst [vmem:[%s3997_s24 + $0xc0] sm:$0xff] %v402_v24  }
  0x29   : > { %407 = vst [vmem:[%s3997_s24 + $0xc8] sm:$0xff] %v406_v25  }
  0x2a   : > { %411 = vst [vmem:[%s3997_s24 + $0xd0] sm:$0xff] %v410_v26  }
  0x2b   : > { %415 = vst [vmem:[%s3997_s24 + $0xd8] sm:$0xff] %v414_v27  }
  0x2c   : > { %419 = vst [vmem:[%s3997_s24 + $0xe0] sm:$0xff] %v418_v28  }
  0x2d   : > { %423 = vst [vmem:[%s3997_s24 + $0xe8] sm:$0xff] %v422_v29  }
  0x2e   : > { %427 = vst [vmem:[%s3997_s24 + $0xf0] sm:$0xff] %v426_v30  }
  0x2f   : > { %431 = vst [vmem:[%s3997_s24 + $0xf8] sm:$0xff] %v430_v31  }
  0x30   : > { %435 = vst [vmem:[%s3997_s24 + $0x100] sm:$0xff] %v434_v32  }
  0x31   : > { %439 = vst [vmem:[%s3997_s24 + $0x108] sm:$0xff] %v438_v33  }
  0x32   : > { %443 = vst [vmem:[%s3997_s24 + $0x110] sm:$0xff] %v442_v34  }
  0x33   : > { %447 = vst [vmem:[%s3997_s24 + $0x118] sm:$0xff] %v446_v35  }
  0x34 PF: > { %617 = sbr.rel (!%p3980_p3) target bundleno = 60 (0x3c), region = 89  ;;  %s619_s25 = sand.u32 (%p3980_p3), 1, %s3894_s10  }
  0x35   : > { %s3710_s26 = sshll.u32 (%p3980_p3), %s3898_s11, 4  ;;  %s3035_s27 = sshll.u32 (%p3980_p3), %s619_s25, 5 }
  0x36   : > { %s624_s14 = scalar_lea.vmem (%p3980_p3), %s4730_s1, %s3710_s26  ;;  %s621_s15 = scalar_lea.vmem (%p3980_p3), [#allocation3], %s3035_s27 }
  0x37   : > { %v659_v36 = vld [vmem:[%s624_s14] sm:$0xff] (%p3980_p3)  ;;  %v661_v37 = vld [vmem:[%s624_s14 + $0x8] sm:$0xff] (%p3980_p3) }
  0x38   : > { %v663_v38 = vld [vmem:[%s624_s14 + $0x20] sm:$0xff] (%p3980_p3)  ;;  %660 = vst [vmem:[%s621_s15] sm:$0xff] (%p3980_p3), %v659_v36  ;;  %v665_v39 = vld [vmem:[%s624_s14 + $0x28] sm:$0xff] (%p3980_p3) }
  0x39   : > { %662 = vst [vmem:[%s621_s15 + $0x8] sm:$0xff] %v661_v37 }
  0x3a   : > { %664 = vst [vmem:[%s621_s15 + $0x10] sm:$0xff] %v663_v38 }
  0x3b   : > { %666 = vst [vmem:[%s621_s15 + $0x18] sm:$0xff] %v665_v39 }
  0x3c PF: > { %p3038_p5 = scmp.ge.s32.totalorder %s3898_s11, 1  ;;  %p671_p6 = scmp.lt.s32.totalorder %s3898_s11, 3 }
  0x3e   : > { %p672_p7 = pnand %p3038_p5, %p671_p6 }
  0x40   : > { %675 = sbr.rel (%p672_p7) target bundleno = 991 (0x3df), region = 127 }
  0x45   : > { %v3778_v40 = vld [vmem:[%s4731_s2 + $0x18] sm:$0xff]  ;;  %v3812_v41 = vld [vmem:[%s4731_s2 + $0x28] sm:$0xff]  ;;  %s678_s21 = sand.u32 1, %s3890_s30   ;;  %v3777_v42 = vld [vmem:[%s4731_s2 + $0x10] sm:$0xff]  ;;  %vm1043_vm0 = vcmask 261120   ;;  %vm2591_vm1 = vcmask 1044480  }
  0x46   : > { %v3744_v43 = vld [vmem:[%s4731_s2 + $0x8] sm:$0xff]  ;;  %v3811_v44 = vld [vmem:[%s4731_s2 + $0x20] sm:$0xff]  ;;  %s3820_s28 = smul.u32 288, %s678_s21  ;;  %3813 = vmatpush.bf16.msra.mxu3 %v3778_v40  ;;  %2090 = vmatpush.bf16.msra.mxu2 %v3812_v41  ;;  %s3039_s24 = sshll.u32 %s678_s21, 5  ;;  %vm2584_vm2 = vcmask 39936  }
  0x47   : > { %1146 = vmatpush.bf16.msra.mxu0 %v3778_v40  ;;  %1583 = vmatpush.bf16.msra.mxu1 %v3744_v43  ;;  %v3743_v45 = vld [vmem:[%s4731_s2] sm:$0xff]  ;;  %s4338_s25 = scalar_lea.vmem [#allocation3], %s3039_s24  ;;  %s3900_s26 = smov 118  }
  0x48   : > { %s4098_s15 = scalar_lea.vmem [#allocation2], %s3820_s28  ;;  %v4179_v29 = vld [vmem:[%s4732_s3] ss:$0 sm:$0xff]  ;;  %s3901_s27 = smov 123  }
  0x49   : > { %v3771_v46 = vld [vmem:[%s4098_s15 + $0xe8] sm:$0xff]  ;;  %v3779_v47 = vld [vmem:[%s4098_s15 + $0x10] sm:$0xff]  ;;  %v3711_v49 = vld [vmem:[%s4098_s15] sm:$0xff]  ;;  %s3040_s24 = sshll.u32 %s3029_s12, 1 }
  0x4a   : > { %3814 = vmatpush.bf16.msra.mxu3 %v3777_v42  ;;  %2091 = vmatpush.bf16.msra.mxu2 %v3811_v44  ;;  %v3745_v48 = vld [vmem:[%s4098_s15 + $0x8] sm:$0xff]  ;;  %v3772_v50 = vld [vmem:[%s4098_s15 + $0xf0] sm:$0xff]  ;;  %v3780_v51 = vld [vmem:[%s4098_s15 + $0x18] sm:$0xff]  ;;  %p727_p8 = scmp.lt.s32.totalorder %s3040_s24, 3 }
  0x4b   : > { %1147 = vmatpush.bf16.msra.mxu0 %v3777_v42  ;;  %1584 = vmatpush.bf16.msra.mxu1 %v3743_v45  ;;  %v3746_v52 = vld [vmem:[%s4098_s15 + $0x10] sm:$0xff]  ;;  %v3712_v53 = vld [vmem:[%s4098_s15 + $0x8] sm:$0xff]  ;;  %v3773_v54 = vld [vmem:[%s4098_s15 + $0xf8] sm:$0xff] }
  0x4c   : > { %v3781_v55 = vld [vmem:[%s4098_s15 + $0x20] sm:$0xff]  ;;  %v3747_v56 = vld [vmem:[%s4098_s15 + $0x18] sm:$0xff]  ;;  %v3713_v57 = vld [vmem:[%s4098_s15 + $0x10] sm:$0xff]  ;;  %s4778_s24 = smov (!%p727_p8, %s3040_s24), 3 }
  0x4d   : > { %3272 = vmatmul.msk.bf16.vlgmr.msra.gmra.mxu3 %vm1043_vm0, %v3771_v46  ;;  %3650 = vmatmul.msk.bf16.vlgmr.msra.gmra.mxu2 %vm1043_vm0, %v3779_v47  ;;  %v3774_v58 = vld [vmem:[%s4098_s15 + $0x100] sm:$0xff]  ;;  %v3782_v59 = vld [vmem:[%s4098_s15 + $0x28] sm:$0xff]  ;;  %v3714_v61 = vld [vmem:[%s4098_s15 + $0x18] sm:$0xff] }
  0x4e   : > { %3815 = vmatpush.bf16.msrb.mxu3 %v3744_v43  ;;  %3246 = vmatmul.msk.bf16.vlgmr.msra.gmra.mxu0 %vm1043_vm0, %v3745_v48  ;;  %v3748_v60 = vld [vmem:[%s4098_s15 + $0x20] sm:$0xff]  ;;  %v3775_v62 = vld [vmem:[%s4098_s15 + $0x108] sm:$0xff]  ;;  %v3783_v63 = vld [vmem:[%s4098_s15 + $0x30] sm:$0xff] }
  0x4f   : > { %3414 = vmatmul.msk.bf16.vlgmr.msra.gmra.mxu1 %vm1043_vm0, %v3711_v49  ;;  %v3749_v0 = vld [vmem:[%s4098_s15 + $0x28] sm:$0xff]  ;;  %v3715_v1 = vld [vmem:[%s4098_s15 + $0x20] sm:$0xff]  ;;  %v3776_v2 = vld [vmem:[%s4098_s15 + $0x110] sm:$0xff] }
  0x50   : > { %v3784_v3 = vld [vmem:[%s4098_s15 + $0x38] sm:$0xff]  ;;  %v3750_v4 = vld [vmem:[%s4098_s15 + $0x30] sm:$0xff]  ;;  %v3716_v5 = vld [vmem:[%s4098_s15 + $0x28] sm:$0xff] }
  0x51   : > { %v3737_v6 = vld [vmem:[%s4098_s15 + $0xe0] sm:$0xff]  ;;  %v3751_v8 = vld [vmem:[%s4098_s15 + $0x38] sm:$0xff]  ;;  %v3717_v9 = vld [vmem:[%s4098_s15 + $0x30] sm:$0xff] }
  0x52   : > { %3816 = vmatpush.bf16.msrb.mxu3 %v3743_v45  ;;  %v3785_v7 = vld [vmem:[%s4098_s15 + $0x40] sm:$0xff]  ;;  %v3738_v10 = vld [vmem:[%s4098_s15 + $0xe8] sm:$0xff]  ;;  %v3718_v13 = vld [vmem:[%s4098_s15 + $0x38] sm:$0xff] }
  0x53   : > { %v3786_v11 = vld [vmem:[%s4098_s15 + $0x48] sm:$0xff]  ;;  %v3752_v12 = vld [vmem:[%s4098_s15 + $0x40] sm:$0xff]  ;;  %v3739_v14 = vld [vmem:[%s4098_s15 + $0xf0] sm:$0xff] }
  0x54   : > { %v3787_v15 = vld [vmem:[%s4098_s15 + $0x50] sm:$0xff]  ;;  %v3753_v16 = vld [vmem:[%s4098_s15 + $0x48] sm:$0xff]  ;;  %v3719_v18 = vld [vmem:[%s4098_s15 + $0x40] sm:$0xff] }
  0x55   : > { %v3740_v31 = vld [vmem:[%s4098_s15 + $0xf8] sm:$0xff]  ;;  %v3754_v33 = vld [vmem:[%s4098_s15 + $0x50] sm:$0xff]  ;;  %v3720_v35 = vld [vmem:[%s4098_s15 + $0x48] sm:$0xff] }
  0x56   : > { %3817 = vmatpush.bf16.msra.mxu3 %v3812_v41  ;;  %v3788_v32 = vld [vmem:[%s4098_s15 + $0x58] sm:$0xff] }
  0x5a   : > { %3818 = vmatpush.bf16.msra.mxu3 %v3811_v44 }
  0x5d   : > { %3273 = vmatmul.msk.bf16.gmra.mxu3 %vm1043_vm0, %v3772_v50  ;;  %3651 = vmatmul.msk.bf16.gmra.mxu2 %vm1043_vm0, %v3780_v51 }
  0x5e   : > { %3247 = vmatmul.msk.bf16.gmra.mxu0 %vm1043_vm0, %v3746_v52 }
  0x5f   : > { %3415 = vmatmul.msk.bf16.gmra.mxu1 %vm1043_vm0, %v3712_v53 }
  0x6d   : > { %3274 = vmatmul.msk.bf16.gmra.mxu3 %vm1043_vm0, %v3773_v54  ;;  %3652 = vmatmul.msk.bf16.gmra.mxu2 %vm1043_vm0, %v3781_v55 }
  0x6e   : > { %3248 = vmatmul.msk.bf16.gmra.mxu0 %vm1043_vm0, %v3747_v56  ;;  %v3741_v56 = vld [vmem:[%s4098_s15 + $0x100] sm:$0xff] }
  0x6f   : > { %3416 = vmatmul.msk.bf16.gmra.mxu1 %vm1043_vm0, %v3713_v57  ;;  %v3789_v57 = vld [vmem:[%s4098_s15 + $0x60] sm:$0xff] }
  0x7d   : > { %3275 = vmatmul.msk.bf16.gmra.mxu3 %vm1043_vm0, %v3774_v58  ;;  %3653 = vmatmul.msk.bf16.gmra.mxu2 %vm1043_vm0, %v3782_v59  ;;  %v3755_v58 = vld [vmem:[%s4098_s15 + $0x58] sm:$0xff] }
  0x7e   : > { %3249 = vmatmul.msk.bf16.gmra.mxu0 %vm1043_vm0, %v3748_v60 }
  0x7f   : > { %3417 = vmatmul.msk.bf16.gmra.mxu1 %vm1043_vm0, %v3714_v61  ;;  %v3721_v61 = vld [vmem:[%s4098_s15 + $0x50] sm:$0xff] }
  0x8d   : > { %3276 = vmatmul.msk.bf16.gmra.mxu3 %vm1043_vm0, %v3775_v62  ;;  %3654 = vmatmul.msk.bf16.gmra.mxu2 %vm1043_vm0, %v3783_v63 }
  0x8e   : > { %3250 = vmatmul.msk.bf16.gmra.mxu0 %vm1043_vm0, %v3749_v0 }
  0x8f   : > { %3418 = vmatmul.msk.bf16.gmra.mxu1 %vm1043_vm0, %v3715_v1 }
  0x9d   : > { %3277 = vmatmul.msk.bf16.gmra.mxu3 %vm1043_vm0, %v3776_v2  ;;  %3655 = vmatmul.msk.bf16.gmra.mxu2 %vm1043_vm0, %v3784_v3 }
  0x9e   : > { %3251 = vmatmul.msk.bf16.gmra.mxu0 %vm1043_vm0, %v3750_v4 }
  0x9f   : > { %3419 = vmatmul.msk.bf16.gmra.mxu1 %vm1043_vm0, %v3716_v5 }
  0xad   : > { %3440 = vmatmul.msk.bf16.vlgmr.msrb.gmra.mxu3 %vm1043_vm0, %v3737_v6  ;;  %3656 = vmatmul.msk.bf16.gmra.mxu2 %vm1043_vm0, %v3785_v7  ;;  %v2579_v6 = vld [vmem:[%s4734_s5] sm:$0x1f] }
  0xae   : > { %3252 = vmatmul.msk.bf16.gmra.mxu0 %vm1043_vm0, %v3751_v8  ;;  %3682 = vmatpush.msk.msrb.mxu3 %vm2591_vm1, %v2579_v6 }
  0xaf   : > { %3420 = vmatmul.msk.bf16.gmra.mxu1 %vm1043_vm0, %v3717_v9 }
  0xbd   : > { %3441 = vmatmul.msk.bf16.gmra.mxu3 %vm1043_vm0, %v3738_v10  ;;  %3657 = vmatmul.msk.bf16.gmra.mxu2 %vm1043_vm0, %v3786_v11 }
  0xbe   : > { %3253 = vmatmul.msk.bf16.gmra.mxu0 %vm1043_vm0, %v3752_v12 }
  0xbf   : > { %3421 = vmatmul.msk.bf16.gmra.mxu1 %vm1043_vm0, %v3718_v13 }
  0xcb   : > { %v1149_v17 = vpop.f32.mrf.mxu0 }
  0xcc   : > { %v1586_v19 = vpop.f32.mrf.mxu1 }
  0xcd   : > { %3442 = vmatmul.msk.bf16.gmra.mxu3 %vm1043_vm0, %v3739_v14  ;;  %3658 = vmatmul.msk.bf16.gmra.mxu2 %vm1043_vm0, %v3787_v15  ;;  %v1587_v20 = vadd.f32 %v1586_v19, %v1149_v17  ;;  %v3790_v19 = vld [vmem:[%s4098_s15 + $0x68] sm:$0xff] }
  0xce   : > { %3254 = vmatmul.msk.bf16.gmra.mxu0 %vm1043_vm0, %v3753_v16 }
  0xcf   : > { %3422 = vmatmul.msk.bf16.gmra.mxu1 %vm1043_vm0, %v3719_v18  ;;  %v3742_v18 = vld [vmem:[%s4098_s15 + $0x108] sm:$0xff] }
  0xd0   : > { %v4172_v21 = vpop.f32.mrf.mxu3  ;;  %v2093_v22 = vpop.f32.mrf.mxu2 }
  0xd1   : > { %v2253_v23 = vadd.f32 %v2093_v22, %v1587_v20  ;;  %v3756_v20 = vld [vmem:[%s4098_s15 + $0x60] sm:$0xff] }
  0xd3   : > { %v1151_v24 = vpop.f32.mrf.mxu0  ;;  %v2321_v37 = vadd.f32 %v4179_v29, %v2253_v23 }
  0xd4   : > { %v1588_v25 = vpop.f32.mrf.mxu1 }
  0xd5   : > { %v1589_v26 = vadd.f32 %v1588_v25, %v1151_v24  ;;  %v2385_v41 = vmax.f32 %v2321_v37, 0.0  ;;  %v3722_v24 = vld [vmem:[%s4098_s15 + $0x58] sm:$0xff] }
  0xd7   : > { %v2449_v46 = vsel %vm1043_vm0, %v2385_v41, -inf }
  0xd8   : > { %v4174_v27 = vpop.f32.mrf.mxu3  ;;  %v2095_v28 = vpop.f32.mrf.mxu2 }
  0xd9   : > { %v2254_v30 = vadd.f32 %v2095_v28, %v1589_v26 }
  0xdb   : > { %v1154_v34 = vpop.f32.mrf.mxu0  ;;  %v2322_v47 = vadd.f32 %v4179_v29, %v2254_v30 }
  0xdc   : > { %v1591_v36 = vpop.f32.mrf.mxu1 }
  0xdd   : > { %3443 = vmatmul.msk.bf16.gmra.mxu3 %vm1043_vm0, %v3740_v31  ;;  %3659 = vmatmul.msk.bf16.gmra.mxu2 %vm1043_vm0, %v3788_v32  ;;  %v1592_v38 = vadd.f32 %v1591_v36, %v1154_v34  ;;  %v2386_v54 = vmax.f32 %v2322_v47, 0.0  ;;  %v3805_v47 = vld [vmem:[%s4098_s15 + $0xf0] sm:$0xff] }
  0xde   : > { %3255 = vmatmul.msk.bf16.gmra.mxu0 %vm1043_vm0, %v3754_v33 }
  0xdf   : > { %3423 = vmatmul.msk.bf16.gmra.mxu1 %vm1043_vm0, %v3720_v35  ;;  %v2480_v63 = vsel %vm1043_vm0, %v2386_v54, -inf }
  0xe0   : > { %v4190_v39 = vpop.f32.mrf.mxu3  ;;  %v2098_v40 = vpop.f32.mrf.mxu2 }
  0xe1   : > { %v2255_v42 = vadd.f32 %v2098_v40, %v1592_v38 }
  0xe3   : > { %v2323_v43 = vadd.f32 %v4179_v29, %v2255_v42  ;;  %v1156_v44 = vpop.f32.mrf.mxu0 }
  0xe4   : > { %v1593_v45 = vpop.f32.mrf.mxu1 }
  0xe5   : > { %v2387_v48 = vmax.f32 %v2323_v43, 0.0  ;;  %v1594_v49 = vadd.f32 %v1593_v45, %v1156_v44 }
  0xe7   : > { %v2450_v50 = vsel %vm1043_vm0, %v2387_v48, -inf  ;;  %v3757_v48 = vld [vmem:[%s4098_s15 + $0x68] sm:$0xff] }
  0xe8   : > { %v2451_v51 = vmax.f32 %v2449_v46, %v2450_v50  ;;  %v4196_v52 = vpop.f32.mrf.mxu3  ;;  %v2100_v53 = vpop.f32.mrf.mxu2  ;;  %v3791_v46 = vld [vmem:[%s4098_s15 + $0x70] sm:$0xff] }
  0xe9   : > { %v2256_v55 = vadd.f32 %v2100_v53, %v1594_v49 }
  0xeb   : > { %v2324_v59 = vadd.f32 %v4179_v29, %v2256_v55  ;;  %v1159_v60 = vpop.f32.mrf.mxu0 }
  0xec   : > { %v1596_v62 = vpop.f32.mrf.mxu1 }
  0xed   : > { %v2388_v0 = vmax.f32 %v2324_v59, 0.0  ;;  %3444 = vmatmul.msk.bf16.gmra.mxu3 %vm1043_vm0, %v3741_v56  ;;  %3660 = vmatmul.msk.bf16.gmra.mxu2 %vm1043_vm0, %v3789_v57  ;;  %v1597_v1 = vadd.f32 %v1596_v62, %v1159_v60 }
  0xee   : > { %3256 = vmatmul.msk.bf16.gmra.mxu0 %vm1043_vm0, %v3755_v58 }
  0xef   : > { %v2481_v2 = vsel %vm1043_vm0, %v2388_v0, -inf  ;;  %3424 = vmatmul.msk.bf16.gmra.mxu1 %vm1043_vm0, %v3721_v61 }
  0xf0   : > { %v2482_v3 = vmax.f32 %v2480_v63, %v2481_v2  ;;  %v4209_v4 = vpop.f32.mrf.mxu3  ;;  %v2103_v5 = vpop.f32.mrf.mxu2 }
  0xf1   : > { %v2257_v7 = vadd.f32 %v2103_v5, %v1597_v1 }
  0xf3   : > { %v2325_v8 = vadd.f32 %v4179_v29, %v2257_v7  ;;  %v1161_v9 = vpop.f32.mrf.mxu0 }
  0xf4   : > { %v1598_v10 = vpop.f32.mrf.mxu1 }
  0xf5   : > { %v2389_v11 = vmax.f32 %v2325_v8, 0.0  ;;  %v1599_v12 = vadd.f32 %v1598_v10, %v1161_v9  ;;  %v3792_v8 = vld [vmem:[%s4098_s15 + $0x78] sm:$0xff]  ;;  %v3758_v10 = vld [vmem:[%s4098_s15 + $0x70] sm:$0xff] }
  0xf6   : > { %v3806_v9 = vld [vmem:[%s4098_s15 + $0xf8] sm:$0xff] }
  0xf7   : > { %v2452_v13 = vsel %vm1043_vm0, %v2389_v11, -inf }
  0xf8   : > { %v2453_v14 = vmax.f32 %v2451_v51, %v2452_v13  ;;  %v4217_v15 = vpop.f32.mrf.mxu3  ;;  %v2105_v16 = vpop.f32.mrf.mxu2  ;;  %v3723_v51 = vld [vmem:[%s4098_s15 + $0x60] sm:$0xff]  ;;  %v3724_v13 = vld [vmem:[%s4098_s15 + $0x68] sm:$0xff] }
  0xf9   : > { %v2258_v17 = vadd.f32 %v2105_v16, %v1599_v12 }
  0xfb   : > { %v2326_v22 = vadd.f32 %v4179_v29, %v2258_v17  ;;  %v1164_v23 = vpop.f32.mrf.mxu0 }
  0xfc   : > { %v1601_v25 = vpop.f32.mrf.mxu1 }
  0xfd   : > { %v2390_v26 = vmax.f32 %v2326_v22, 0.0  ;;  %3445 = vmatmul.msk.bf16.gmra.mxu3 %vm1043_vm0, %v3742_v18  ;;  %3661 = vmatmul.msk.bf16.gmra.mxu2 %vm1043_vm0, %v3790_v19  ;;  %v1602_v28 = vadd.f32 %v1601_v25, %v1164_v23 }
  0xfe   : > { %3257 = vmatmul.msk.bf16.gmra.mxu0 %vm1043_vm0, %v3756_v20 }
  0xff   : > { %v2483_v30 = vsel %vm1043_vm0, %v2390_v26, -inf  ;;  %3425 = vmatmul.msk.bf16.gmra.mxu1 %vm1043_vm0, %v3722_v24 }
 0x100   : > { %v2484_v31 = vmax.f32 %v2482_v3, %v2483_v30  ;;  %v4229_v32 = vpop.f32.mrf.mxu3  ;;  %v2108_v33 = vpop.f32.mrf.mxu2 }
 0x101   : > { %v2259_v34 = vadd.f32 %v2108_v33, %v1602_v28 }
 0x103   : > { %v2327_v35 = vadd.f32 %v4179_v29, %v2259_v34  ;;  %v1166_v36 = vpop.f32.mrf.mxu0 }
 0x104   : > { %v1603_v37 = vpop.f32.mrf.mxu1 }
 0x105   : > { %v2391_v38 = vmax.f32 %v2327_v35, 0.0  ;;  %v1604_v40 = vadd.f32 %v1603_v37, %v1166_v36  ;;  %v3793_v37 = vld [vmem:[%s4098_s15 + $0x80] sm:$0xff] }
 0x107   : > { %v2454_v41 = vsel %vm1043_vm0, %v2391_v38, -inf  ;;  %v3807_v38 = vld [vmem:[%s4098_s15 + $0x100] sm:$0xff] }
 0x108   : > { %v2455_v42 = vmax.f32 %v2453_v14, %v2454_v41  ;;  %v4233_v43 = vpop.f32.mrf.mxu3  ;;  %v2110_v44 = vpop.f32.mrf.mxu2 }
 0x109   : > { %v2260_v45 = vadd.f32 %v2110_v44, %v1604_v40  ;;  %v3759_v40 = vld [vmem:[%s4098_s15 + $0x78] sm:$0xff]  ;;  %v3725_v44 = vld [vmem:[%s4098_s15 + $0x70] sm:$0xff] }
 0x10b   : > { %v2328_v49 = vadd.f32 %v4179_v29, %v2260_v45  ;;  %v1169_v50 = vpop.f32.mrf.mxu0 }
 0x10c   : > { %v1606_v53 = vpop.f32.mrf.mxu1 }
 0x10d   : > { %v2392_v54 = vmax.f32 %v2328_v49, 0.0  ;;  %3662 = vmatmul.msk.bf16.gmra.mxu2 %vm1043_vm0, %v3791_v46  ;;  %3676 = vmatmul.msk.bf16.vlgmr.msra.gmra.mxu3 %vm1043_vm0, %v3805_v47  ;;  %v1607_v55 = vadd.f32 %v1606_v53, %v1169_v50 }
 0x10e   : > { %3258 = vmatmul.msk.bf16.gmra.mxu0 %vm1043_vm0, %v3757_v48 }
 0x10f   : > { %v2485_v56 = vsel %vm1043_vm0, %v2392_v54, -inf  ;;  %3426 = vmatmul.msk.bf16.gmra.mxu1 %vm1043_vm0, %v3723_v51 }
 0x110   : > { %v2486_v57 = vmax.f32 %v2484_v31, %v2485_v56  ;;  %v4245_v58 = vpop.f32.mrf.mxu3  ;;  %v2113_v59 = vpop.f32.mrf.mxu2 }
 0x111   : > { %v2261_v60 = vadd.f32 %v2113_v59, %v1607_v55 }
 0x113   : > { %v2329_v61 = vadd.f32 %v4179_v29, %v2261_v60  ;;  %v1171_v62 = vpop.f32.mrf.mxu0 }
 0x114   : > { %v1608_v63 = vpop.f32.mrf.mxu1 }
 0x115   : > { %v2393_v0 = vmax.f32 %v2329_v61, 0.0  ;;  %v1609_v1 = vadd.f32 %v1608_v63, %v1171_v62 }
 0x117   : > { %v2456_v2 = vsel %vm1043_vm0, %v2393_v0, -inf }
 0x118   : > { %v2457_v3 = vmax.f32 %v2455_v42, %v2456_v2  ;;  %v4249_v5 = vpop.f32.mrf.mxu3  ;;  %v2115_v6 = vpop.f32.mrf.mxu2  ;;  %v3808_v2 = vld [vmem:[%s4098_s15 + $0x108] sm:$0xff] }
 0x119   : > { %v2262_v7 = vadd.f32 %v2115_v6, %v1609_v1  ;;  %v3794_v1 = vld [vmem:[%s4098_s15 + $0x88] sm:$0xff] }
 0x11b   : > { %v2330_v11 = vadd.f32 %v4179_v29, %v2262_v7  ;;  %v1174_v12 = vpop.f32.mrf.mxu0 }
 0x11c   : > { %v1611_v14 = vpop.f32.mrf.mxu1 }
 0x11d   : > { %v2394_v16 = vmax.f32 %v2330_v11, 0.0  ;;  %3663 = vmatmul.msk.bf16.gmra.mxu2 %vm1043_vm0, %v3792_v8  ;;  %3677 = vmatmul.msk.bf16.gmra.mxu3 %vm1043_vm0, %v3806_v9  ;;  %v1612_v17 = vadd.f32 %v1611_v14, %v1174_v12  ;;  %v3726_v8 = vld [vmem:[%s4098_s15 + $0x78] sm:$0xff] }
 0x11e   : > { %3259 = vmatmul.msk.bf16.gmra.mxu0 %vm1043_vm0, %v3758_v10 }
 0x11f   : > { %v2487_v18 = vsel %vm1043_vm0, %v2394_v16, -inf  ;;  %3427 = vmatmul.msk.bf16.gmra.mxu1 %vm1043_vm0, %v3724_v13 }
 0x120   : > { %v2488_v19 = vmax.f32 %v2486_v57, %v2487_v18  ;;  %v4261_v20 = vpop.f32.mrf.mxu3  ;;  %v2118_v22 = vpop.f32.mrf.mxu2 }
 0x121   : > { %v2263_v23 = vadd.f32 %v2118_v22, %v1612_v17 }
 0x123   : > { %v2331_v24 = vadd.f32 %v4179_v29, %v2263_v23  ;;  %v1176_v25 = vpop.f32.mrf.mxu0 }
 0x124   : > { %v1613_v26 = vpop.f32.mrf.mxu1 }
 0x125   : > { %v2395_v28 = vmax.f32 %v2331_v24, 0.0  ;;  %v1614_v30 = vadd.f32 %v1613_v26, %v1176_v25 }
 0x127   : > { %v2458_v31 = vsel %vm1043_vm0, %v2395_v28, -inf }
 0x128   : > { %v2459_v33 = vmax.f32 %v2457_v3, %v2458_v31  ;;  %v4265_v34 = vpop.f32.mrf.mxu3  ;;  %v2120_v35 = vpop.f32.mrf.mxu2  ;;  %v3760_v3 = vld [vmem:[%s4098_s15 + $0x80] sm:$0xff] }
 0x129   : > { %v2264_v36 = vadd.f32 %v2120_v35, %v1614_v30  ;;  %v3809_v35 = vld [vmem:[%s4098_s15 + $0x110] sm:$0xff] }
 0x12b   : > { %v2332_v41 = vadd.f32 %v4179_v29, %v2264_v36  ;;  %v1179_v42 = vpop.f32.mrf.mxu0  ;;  %v3761_v36 = vld [vmem:[%s4098_s15 + $0x98] sm:$0xff] }
 0x12c   : > { %v1616_v45 = vpop.f32.mrf.mxu1 }
 0x12d   : > { %v2396_v46 = vmax.f32 %v2332_v41, 0.0  ;;  %3664 = vmatmul.msk.bf16.gmra.mxu2 %vm1043_vm0, %v3793_v37  ;;  %3678 = vmatmul.msk.bf16.gmra.mxu3 %vm1043_vm0, %v3807_v38  ;;  %v1617_v47 = vadd.f32 %v1616_v45, %v1179_v42 }
 0x12e   : > { %3260 = vmatmul.msk.bf16.gmra.mxu0 %vm1043_vm0, %v3759_v40  ;;  %v3727_v40 = vld [vmem:[%s4098_s15 + $0x90] sm:$0xff] }
 0x12f   : > { %v2489_v48 = vsel %vm1043_vm0, %v2396_v46, -inf  ;;  %3428 = vmatmul.msk.bf16.gmra.mxu1 %vm1043_vm0, %v3725_v44 }
 0x130   : > { %v2490_v49 = vmax.f32 %v2488_v19, %v2489_v48  ;;  %v4277_v50 = vpop.f32.mrf.mxu3  ;;  %v2123_v51 = vpop.f32.mrf.mxu2 }
 0x131   : > { %v2265_v53 = vadd.f32 %v2123_v51, %v1617_v47 }
 0x133   : > { %v2333_v54 = vadd.f32 %v4179_v29, %v2265_v53  ;;  %v1181_v55 = vpop.f32.mrf.mxu0 }
 0x134   : > { %v1618_v56 = vpop.f32.mrf.mxu1 }
 0x135   : > { %v2397_v57 = vmax.f32 %v2333_v54, 0.0  ;;  %v1619_v59 = vadd.f32 %v1618_v56, %v1181_v55 }
 0x137   : > { %v2460_v60 = vsel %vm1043_vm0, %v2397_v57, -inf }
 0x138   : > { %v2461_v61 = vmax.f32 %v2459_v33, %v2460_v60  ;;  %v4281_v62 = vpop.f32.mrf.mxu3  ;;  %v2125_v63 = vpop.f32.mrf.mxu2  ;;  %v3795_v33 = vld [vmem:[%s4098_s15 + $0xa0] sm:$0xff] }
 0x139   : > { %v2266_v0 = vadd.f32 %v2125_v63, %v1619_v59 }
 0x13b   : > { %v2334_v6 = vadd.f32 %v4179_v29, %v2266_v0  ;;  %v1184_v7 = vpop.f32.mrf.mxu0 }
 0x13c   : > { %v1621_v9 = vpop.f32.mrf.mxu1 }
 0x13d   : > { %v2398_v10 = vmax.f32 %v2334_v6, 0.0  ;;  %3665 = vmatmul.msk.bf16.gmra.mxu2 %vm1043_vm0, %v3794_v1  ;;  %3679 = vmatmul.msk.bf16.gmra.mxu3 %vm1043_vm0, %v3808_v2  ;;  %v1622_v11 = vadd.f32 %v1621_v9, %v1184_v7  ;;  %v3796_v1 = vld [vmem:[%s4098_s15 + $0xa8] sm:$0xff]  ;;  %v3810_v2 = vld [vmem:[%s4098_s15 + $0x118] sm:$0xff] }
 0x13e   : > { %3261 = vmatmul.msk.bf16.gmra.mxu0 %vm1043_vm0, %v3760_v3  ;;  %v3762_v3 = vld [vmem:[%s4098_s15 + $0xa0] sm:$0xff] }
 0x13f   : > { %v2491_v12 = vsel %vm1043_vm0, %v2398_v10, -inf  ;;  %3429 = vmatmul.msk.bf16.gmra.mxu1 %vm1043_vm0, %v3726_v8  ;;  %v3728_v8 = vld [vmem:[%s4098_s15 + $0x98] sm:$0xff] }
 0x140   : > { %v2492_v13 = vmax.f32 %v2490_v49, %v2491_v12  ;;  %v4293_v14 = vpop.f32.mrf.mxu3  ;;  %v2128_v16 = vpop.f32.mrf.mxu2  ;;  %v3687_v49 = vld [vmem:[%s4734_s5 + $0x8] sm:$0x1f] }
 0x141   : > { %v2267_v17 = vadd.f32 %v2128_v16, %v1622_v11  ;;  %3689 = vmatpush.msk.msra.mxu3 %vm2591_vm1, %v3687_v49 }
 0x143   : > { %v2335_v18 = vadd.f32 %v4179_v29, %v2267_v17  ;;  %v1186_v19 = vpop.f32.mrf.mxu0 }
 0x144   : > { %v1623_v22 = vpop.f32.mrf.mxu1 }
 0x145   : > { %v2399_v23 = vmax.f32 %v2335_v18, 0.0  ;;  %v1624_v24 = vadd.f32 %v1623_v22, %v1186_v19 }
 0x147   : > { %v2462_v25 = vsel %vm1043_vm0, %v2399_v23, -inf }
 0x148   : > { %v2463_v26 = vmax.f32 %v2461_v61, %v2462_v25  ;;  %v4297_v28 = vpop.f32.mrf.mxu3  ;;  %v2130_v30 = vpop.f32.mrf.mxu2 }
 0x149   : > { %v2268_v31 = vadd.f32 %v2130_v30, %v1624_v24 }
 0x14b   : > { %v2336_v37 = vadd.f32 %v4179_v29, %v2268_v31  ;;  %v1189_v38 = vpop.f32.mrf.mxu0 }
 0x14c   : > { %v1626_v41 = vpop.f32.mrf.mxu1 }
 0x14d   : > { %v2400_v42 = vmax.f32 %v2336_v37, 0.0  ;;  %3666 = vmatmul.msk.bf16.gmra.mxu2 %vm1043_vm0, %v3795_v33  ;;  %3680 = vmatmul.msk.bf16.gmra.mxu3 %vm1043_vm0, %v3809_v35  ;;  %v1627_v44 = vadd.f32 %v1626_v41, %v1189_v38  ;;  %v2577_v37 = vld [vmem:[%s4338_s25] sm:$0xff]  ;;  %v3763_v38 = vld [vmem:[%s4098_s15 + $0xa8] sm:$0xff] }
 0x14e   : > { %3262 = vmatmul.msk.bf16.gmra.mxu0 %vm1043_vm0, %v3761_v36  ;;  %v3797_v36 = vld [vmem:[%s4098_s15 + $0xb0] sm:$0xff] }
 0x14f   : > { %v2493_v45 = vsel %vm1043_vm0, %v2400_v42, -inf  ;;  %3430 = vmatmul.msk.bf16.gmra.mxu1 %vm1043_vm0, %v3727_v40  ;;  %v3729_v42 = vld [vmem:[%s4098_s15 + $0xa0] sm:$0xff] }
 0x150   : > { %v2494_v46 = vmax.f32 %v2492_v13, %v2493_v45  ;;  %v4309_v47 = vpop.f32.mrf.mxu3  ;;  %v2133_v48 = vpop.f32.mrf.mxu2 }
 0x151   : > { %v2269_v51 = vadd.f32 %v2133_v48, %v1627_v44 }
 0x153   : > { %v2337_v53 = vadd.f32 %v4179_v29, %v2269_v51  ;;  %v1191_v54 = vpop.f32.mrf.mxu0 }
 0x154   : > { %v1628_v55 = vpop.f32.mrf.mxu1 }
 0x155   : > { %v2401_v56 = vmax.f32 %v2337_v53, 0.0  ;;  %v1629_v57 = vadd.f32 %v1628_v55, %v1191_v54  ;;  %v2578_v55 = vld [vmem:[%s4338_s25 + $0x8] sm:$0xff] }
 0x157   : > { %v2464_v59 = vsel %vm1043_vm0, %v2401_v56, -inf }
 0x158   : > { %v2465_v60 = vmax.f32 %v2463_v26, %v2464_v59  ;;  %v4317_v61 = vpop.f32.mrf.mxu3  ;;  %v2135_v63 = vpop.f32.mrf.mxu2 }
 0x159   : > { %v2270_v0 = vadd.f32 %v2135_v63, %v1629_v57 }
 0x15b   : > { %v2338_v6 = vadd.f32 %v4179_v29, %v2270_v0  ;;  %v1194_v7 = vpop.f32.mrf.mxu0 }
 0x15c   : > { %v1631_v9 = vpop.f32.mrf.mxu1 }
 0x15d   : > { %v2402_v10 = vmax.f32 %v2338_v6, 0.0  ;;  %3667 = vmatmul.msk.bf16.gmra.mxu2 %vm1043_vm0, %v3796_v1  ;;  %3681 = vmatmul.msk.bf16.gmra.mxu3 %vm1043_vm0, %v3810_v2  ;;  %v1632_v11 = vadd.f32 %v1631_v9, %v1194_v7  ;;  %v3798_v7 = vld [vmem:[%s4098_s15 + $0xb8] sm:$0xff]  ;;  %v3764_v9 = vld [vmem:[%s4098_s15 + $0xb0] sm:$0xff] }
 0x15e   : > { %3263 = vmatmul.msk.bf16.gmra.mxu0 %vm1043_vm0, %v3762_v3 }
 0x15f   : > { %v2495_v12 = vsel %vm1043_vm0, %v2402_v10, -inf  ;;  %3431 = vmatmul.msk.bf16.gmra.mxu1 %vm1043_vm0, %v3728_v8  ;;  %v3685_v8 = vld [vmem:[%s4338_s25 + $0x10] sm:$0xff] }
 0x160   : > { %v2496_v13 = vmax.f32 %v2494_v46, %v2495_v12  ;;  %v4329_v16 = vpop.f32.mrf.mxu3  ;;  %v2138_v17 = vpop.f32.mrf.mxu2  ;;  %v3730_v12 = vld [vmem:[%s4098_s15 + $0xa8] sm:$0xff] }
 0x161   : > { %v2271_v18 = vadd.f32 %v2138_v17, %v1632_v11 }
 0x163   : > { %v2339_v19 = vadd.f32 %v4179_v29, %v2271_v18  ;;  %v1196_v22 = vpop.f32.mrf.mxu0 }
 0x164   : > { %v1633_v23 = vpop.f32.mrf.mxu1 }
 0x165   : > { %v2403_v24 = vmax.f32 %v2339_v19, 0.0  ;;  %v1634_v25 = vadd.f32 %v1633_v23, %v1196_v22 }
 0x167   : > { %v2466_v26 = vsel %vm1043_vm0, %v2403_v24, -inf }
 0x168   : > { %v2467_v30 = vmax.f32 %v2465_v60, %v2466_v26  ;;  %v4335_v31 = vpop.f32.mrf.mxu3  ;;  %v2140_v33 = vpop.f32.mrf.mxu2  ;;  %v3686_v26 = vld [vmem:[%s4338_s25 + $0x18] sm:$0xff]  ;;  %s3041_s25 = sshll.u32 %s4778_s24, 3 }
 0x169   : > { %v2272_v35 = vadd.f32 %v2140_v33, %v1634_v25 }
 0x16b   : > { %v2340_v40 = vadd.f32 %v4179_v29, %v2272_v35  ;;  %v1199_v41 = vpop.f32.mrf.mxu0 }
 0x16c   : > { %v1636_v44 = vpop.f32.mrf.mxu1 }
 0x16d   : > { %v2404_v45 = vmax.f32 %v2340_v40, 0.0  ;;  %3668 = vmatmul.msk.bf16.gmra.mxu2 %vm1043_vm0, %v3797_v36  ;;  %3683 = vmatmul.msk.f32.vlgmr.msrb.gmra.mxu3 %vm2584_vm2, %v2577_v37  ;;  %v1637_v46 = vadd.f32 %v1636_v44, %v1199_v41 }
 0x16e   : > { %3264 = vmatmul.msk.bf16.gmra.mxu0 %vm1043_vm0, %v3763_v38 }
 0x16f   : > { %v2497_v48 = vsel %vm1043_vm0, %v2404_v45, -inf  ;;  %3432 = vmatmul.msk.bf16.gmra.mxu1 %vm1043_vm0, %v3729_v42  ;;  %v3799_v45 = vld [vmem:[%s4098_s15 + $0xc0] sm:$0xff] }
 0x170   : > { %v2498_v49 = vmax.f32 %v2496_v13, %v2497_v48  ;;  %v4349_v51 = vpop.f32.mrf.mxu3  ;;  %v2143_v53 = vpop.f32.mrf.mxu2 }
 0x171   : > { %v2273_v54 = vadd.f32 %v2143_v53, %v1637_v46  ;;  %v3765_v46 = vld [vmem:[%s4098_s15 + $0xb8] sm:$0xff]  ;;  %v3731_v53 = vld [vmem:[%s4098_s15 + $0xb0] sm:$0xff] }
 0x173   : > { %v2341_v56 = vadd.f32 %v4179_v29, %v2273_v54  ;;  %v1201_v57 = vpop.f32.mrf.mxu0 }
 0x174   : > { %v1638_v59 = vpop.f32.mrf.mxu1 }
 0x175   : > { %v2405_v60 = vmax.f32 %v2341_v56, 0.0  ;;  %3684 = vmatmul.msk.f32.gmra.mxu3 %vm2584_vm2, %v2578_v55  ;;  %v1639_v63 = vadd.f32 %v1638_v59, %v1201_v57  ;;  %v1717_v57 = vadd.f32 %v4277_v50, %v4172_v21  ;;  %v1719_v21 = vadd.f32 %v4281_v62, %v4174_v27 }
 0x176   : > { %v1722_v27 = vadd.f32 %v4293_v14, %v4190_v39  ;;  %v1724_v39 = vadd.f32 %v4297_v28, %v4196_v52 }
 0x177   : > { %v2468_v0 = vsel %vm1043_vm0, %v2405_v60, -inf }
 0x178   : > { %v2469_v1 = vmax.f32 %v2467_v30, %v2468_v0  ;;  %v4355_v2 = vpop.f32.mrf.mxu3  ;;  %v2145_v3 = vpop.f32.mrf.mxu2 }
 0x179   : > { %v2274_v6 = vadd.f32 %v2145_v3, %v1639_v63 }
 0x17b   : > { %v2342_v10 = vadd.f32 %v4179_v29, %v2274_v6  ;;  %v1204_v11 = vpop.f32.mrf.mxu0 }
 0x17c   : > { %v1641_v13 = vpop.f32.mrf.mxu1 }
 0x17d   : > { %v2406_v17 = vmax.f32 %v2342_v10, 0.0  ;;  %3669 = vmatmul.msk.bf16.gmra.mxu2 %vm1043_vm0, %v3798_v7  ;;  %3690 = vmatmul.msk.f32.vlgmr.msra.gmra.mxu3 %vm2584_vm2, %v3685_v8  ;;  %v1642_v18 = vadd.f32 %v1641_v13, %v1204_v11 }
 0x17e   : > { %3265 = vmatmul.msk.bf16.gmra.mxu0 %vm1043_vm0, %v3764_v9 }
 0x17f   : > { %v2499_v19 = vsel %vm1043_vm0, %v2406_v17, -inf  ;;  %3433 = vmatmul.msk.bf16.gmra.mxu1 %vm1043_vm0, %v3730_v12 }
 0x180   : > { %v2500_v22 = vmax.f32 %v2498_v49, %v2499_v19  ;;  %v4367_v23 = vpop.f32.mrf.mxu3  ;;  %v2148_v24 = vpop.f32.mrf.mxu2  ;;  %v3800_v19 = vld [vmem:[%s4098_s15 + $0xc8] sm:$0xff] }
 0x181   : > { %v2275_v25 = vadd.f32 %v2148_v24, %v1642_v18 }
 0x183   : > { %v2343_v30 = vadd.f32 %v4179_v29, %v2275_v25  ;;  %v1206_v33 = vpop.f32.mrf.mxu0 }
 0x184   : > { %v1643_v35 = vpop.f32.mrf.mxu1 }
 0x185   : > { %v2407_v36 = vmax.f32 %v2343_v30, 0.0  ;;  %3691 = vmatmul.msk.f32.gmra.mxu3 %vm2584_vm2, %v3686_v26  ;;  %v1644_v37 = vadd.f32 %v1643_v35, %v1206_v33  ;;  %v3732_v26 = vld [vmem:[%s4098_s15 + $0xb8] sm:$0xff] }
 0x187   : > { %v2470_v38 = vsel %vm1043_vm0, %v2407_v36, -inf }
 0x188   : > { %v2471_v40 = vmax.f32 %v2469_v1, %v2470_v38  ;;  %v4373_v41 = vpop.f32.mrf.mxu3  ;;  %v2150_v42 = vpop.f32.mrf.mxu2 }
 0x189   : > { %v2276_v44 = vadd.f32 %v2150_v42, %v1644_v37 }
 0x18b   : > { %v2344_v48 = vadd.f32 %v4179_v29, %v2276_v44  ;;  %v1209_v49 = vpop.f32.mrf.mxu0 }
 0x18c   : > { %v1646_v54 = vpop.f32.mrf.mxu1 }
 0x18d   : > { %v2408_v55 = vmax.f32 %v2344_v48, 0.0  ;;  %3670 = vmatmul.msk.bf16.gmra.mxu2 %vm1043_vm0, %v3799_v45  ;;  %v1647_v56 = vadd.f32 %v1646_v54, %v1209_v49 }
 0x18e   : > { %3266 = vmatmul.msk.bf16.gmra.mxu0 %vm1043_vm0, %v3765_v46 }
 0x18f   : > { %v2501_v59 = vsel %vm1043_vm0, %v2408_v55, -inf  ;;  %3434 = vmatmul.msk.bf16.gmra.mxu1 %vm1043_vm0, %v3731_v53 }
 0x190   : > { %v2502_v60 = vmax.f32 %v2500_v22, %v2501_v59  ;;  %v2153_v63 = vpop.f32.mrf.mxu2  ;;  %v2223_v0 = vpop.f32.mrf.mxu3  ;;  %v3766_v22 = vld [vmem:[%s4098_s15 + $0xc0] sm:$0xff]  ;;  %v3801_v59 = vld [vmem:[%s4098_s15 + $0xd0] sm:$0xff] }
 0x191   : > { %v2277_v1 = vadd.f32 %v2153_v63, %v1647_v56  ;;  %v4385_v3 = vadd.f32 %v2223_v0, %v1717_v57 }
 0x193   : > { %v2345_v6 = vadd.f32 %v4179_v29, %v2277_v1  ;;  %v1211_v7 = vpop.f32.mrf.mxu0  ;;  %v3733_v1 = vld [vmem:[%s4098_s15 + $0xc0] sm:$0xff] }
 0x194   : > { %v1648_v8 = vpop.f32.mrf.mxu1 }
 0x195   : > { %v2409_v9 = vmax.f32 %v2345_v6, 0.0  ;;  %v1649_v10 = vadd.f32 %v1648_v8, %v1211_v7 }
 0x197   : > { %v2472_v50 = vsel %vm1043_vm0, %v2409_v9, -inf }
 0x198   : > { %v2473_v11 = vmax.f32 %v2471_v40, %v2472_v50  ;;  %v2155_v12 = vpop.f32.mrf.mxu2  ;;  %v2225_v13 = vpop.f32.mrf.mxu3 }
 0x199   : > { %v2278_v17 = vadd.f32 %v2155_v12, %v1649_v10  ;;  %v4391_v18 = vadd.f32 %v2225_v13, %v1719_v21 }
 0x19b   : > { %v2346_v24 = vadd.f32 %v4179_v29, %v2278_v17  ;;  %v1214_v25 = vpop.f32.mrf.mxu0 }
 0x19c   : > { %v1651_v30 = vpop.f32.mrf.mxu1 }
 0x19d   : > { %v2410_v33 = vmax.f32 %v2346_v24, 0.0  ;;  %3671 = vmatmul.msk.bf16.gmra.mxu2 %vm1043_vm0, %v3800_v19  ;;  %v1652_v35 = vadd.f32 %v1651_v30, %v1214_v25  ;;  %v3802_v30 = vld [vmem:[%s4098_s15 + $0xd8] sm:$0xff] }
 0x19e   : > { %3267 = vmatmul.msk.bf16.gmra.mxu0 %vm1043_vm0, %v3766_v22 }
 0x19f   : > { %v2503_v62 = vsel %vm1043_vm0, %v2410_v33, -inf  ;;  %3435 = vmatmul.msk.bf16.gmra.mxu1 %vm1043_vm0, %v3732_v26  ;;  %v3768_v33 = vld [vmem:[%s4098_s15 + $0xd0] sm:$0xff] }
 0x1a0   : > { %v2504_v36 = vmax.f32 %v2502_v60, %v2503_v62  ;;  %v2158_v37 = vpop.f32.mrf.mxu2  ;;  %v2228_v38 = vpop.f32.mrf.mxu3  ;;  %v3767_v60 = vld [vmem:[%s4098_s15 + $0xc8] sm:$0xff] }
 0x1a1   : > { %v2279_v40 = vadd.f32 %v2158_v37, %v1652_v35  ;;  %v4403_v42 = vadd.f32 %v2228_v38, %v1722_v27  ;;  %v3734_v62 = vld [vmem:[%s4098_s15 + $0xc8] sm:$0xff] }
 0x1a3   : > { %v2347_v44 = vadd.f32 %v4179_v29, %v2279_v40  ;;  %v1216_v45 = vpop.f32.mrf.mxu0 }
 0x1a4   : > { %v1653_v46 = vpop.f32.mrf.mxu1 }
 0x1a5   : > { %v2411_v48 = vmax.f32 %v2347_v44, 0.0  ;;  %v1654_v49 = vadd.f32 %v1653_v46, %v1216_v45 }
 0x1a7   : > { %v2474_v14 = vsel %vm1043_vm0, %v2411_v48, -inf }
 0x1a8   : > { %v2475_v53 = vmax.f32 %v2473_v11, %v2474_v14  ;;  %v2160_v54 = vpop.f32.mrf.mxu2  ;;  %v2230_v55 = vpop.f32.mrf.mxu3 }
 0x1a9   : > { %v2280_v56 = vadd.f32 %v2160_v54, %v1654_v49  ;;  %v4409_v57 = vadd.f32 %v2230_v55, %v1724_v39 }
 0x1ab   : > { %v2348_v63 = vadd.f32 %v4179_v29, %v2280_v56  ;;  %v1219_v0 = vpop.f32.mrf.mxu0 }
 0x1ac   : > { %v1656_v6 = vpop.f32.mrf.mxu1 }
 0x1ad   : > { %v2412_v7 = vmax.f32 %v2348_v63, 0.0  ;;  %3672 = vmatmul.msk.bf16.gmra.mxu2 %vm1043_vm0, %v3801_v59  ;;  %v1657_v8 = vadd.f32 %v1656_v6, %v1219_v0  ;;  %v3803_v0 = vld [vmem:[%s4098_s15 + $0xe0] sm:$0xff] }
 0x1ae   : > { %3268 = vmatmul.msk.bf16.gmra.mxu0 %vm1043_vm0, %v3767_v60 }
 0x1af   : > { %v2505_v52 = vsel %vm1043_vm0, %v2412_v7, -inf  ;;  %3436 = vmatmul.msk.bf16.gmra.mxu1 %vm1043_vm0, %v3733_v1  ;;  %v3769_v1 = vld [vmem:[%s4098_s15 + $0xd8] sm:$0xff] }
 0x1b0   : > { %v2506_v28 = vmax.f32 %v2504_v36, %v2505_v52  ;;  %v2163_v9 = vpop.f32.mrf.mxu2  ;;  %v4419_v10 = vpop.f32.mrf.mxu3 }
 0x1b1   : > { %v2281_v21 = vadd.f32 %v2163_v9, %v1657_v8  ;;  %v3735_v8 = vld [vmem:[%s4098_s15 + $0xd0] sm:$0xff] }
 0x1b3   : > { %v2349_v50 = vadd.f32 %v4179_v29, %v2281_v21  ;;  %v1221_v11 = vpop.f32.mrf.mxu0 }
 0x1b4   : > { %v1658_v12 = vpop.f32.mrf.mxu1 }
 0x1b5   : > { %v2413_v13 = vmax.f32 %v2349_v50, 0.0  ;;  %v1659_v17 = vadd.f32 %v1658_v12, %v1221_v11 }
 0x1b7   : > { %v2476_v19 = vsel %vm1043_vm0, %v2413_v13, -inf }
 0x1b8   : > { %v4423_v22 = vmax.f32 %v2475_v53, %v2476_v19  ;;  %v2165_v24 = vpop.f32.mrf.mxu2  ;;  %v4425_v25 = vpop.f32.mrf.mxu3 }
 0x1b9   : > { %v2282_v26 = vadd.f32 %v2165_v24, %v1659_v17 }
 0x1ba   : > { %4748 = vst [vmem:[#allocation4_spill] sm:$0xff] %v4423_v22 }
 0x1bb   : > { %v2350_v35 = vadd.f32 %v4179_v29, %v2282_v26  ;;  %v1224_v27 = vpop.f32.mrf.mxu0 }
 0x1bc   : > { %v1661_v36 = vpop.f32.mrf.mxu1 }
 0x1bd   : > { %v2414_v37 = vmax.f32 %v2350_v35, 0.0  ;;  %3673 = vmatmul.msk.bf16.gmra.mxu2 %vm1043_vm0, %v3802_v30  ;;  %v1662_v38 = vadd.f32 %v1661_v36, %v1224_v27  ;;  %v3804_v35 = vld [vmem:[%s4098_s15 + $0xe8] sm:$0xff]  ;;  %v3770_v27 = vld [vmem:[%s4098_s15 + $0xe0] sm:$0xff]  ;;  %v3736_v36 = vld [vmem:[%s4098_s15 + $0xd8] sm:$0xff] }
 0x1be   : > { %3269 = vmatmul.msk.bf16.gmra.mxu0 %vm1043_vm0, %v3768_v33 }
 0x1bf   : > { %v2507_v40 = vsel %vm1043_vm0, %v2414_v37, -inf  ;;  %3437 = vmatmul.msk.bf16.gmra.mxu1 %vm1043_vm0, %v3734_v62 }
 0x1c0   : > { %v4435_v44 = vmax.f32 %v2506_v28, %v2507_v40  ;;  %v2168_v45 = vpop.f32.mrf.mxu2  ;;  %v4437_v46 = vpop.f32.mrf.mxu3 }
 0x1c1   : > { %v2283_v48 = vadd.f32 %v2168_v45, %v1662_v38 }
 0x1c2   : > { %4749 = vst [vmem:[#allocation5_spill] sm:$0xff] %v4435_v44 }
 0x1c3   : > { %v2351_v49 = vadd.f32 %v4179_v29, %v2283_v48  ;;  %v1226_v39 = vpop.f32.mrf.mxu0 }
 0x1c4   : > { %v1663_v14 = vpop.f32.mrf.mxu1 }
 0x1c5   : > { %v2415_v53 = vmax.f32 %v2351_v49, 0.0  ;;  %v1664_v54 = vadd.f32 %v1663_v14, %v1226_v39 }
 0x1c7   : > { %v4441_v55 = vsel %vm1043_vm0, %v2415_v53, -inf }
 0x1c8   : > { %4750 = vst [vmem:[#allocation6_spill] sm:$0xff] %v4441_v55  ;;  %v2170_v59 = vpop.f32.mrf.mxu2  ;;  %v4445_v60 = vpop.f32.mrf.mxu3 }
 0x1c9   : > { %4751 = vst [vmem:[#allocation7_spill] sm:$0xff] %v4445_v60  ;;  %v2284_v63 = vadd.f32 %v2170_v59, %v1664_v54 }
 0x1cb   : > { %v2352_v6 = vadd.f32 %v4179_v29, %v2284_v63  ;;  %v1229_v7 = vpop.f32.mrf.mxu0 }
 0x1cc   : > { %v1666_v52 = vpop.f32.mrf.mxu1 }
 0x1cd   : > { %v2416_v28 = vmax.f32 %v2352_v6, 0.0  ;;  %3674 = vmatmul.msk.bf16.gmra.mxu2 %vm1043_vm0, %v3803_v0  ;;  %v1667_v9 = vadd.f32 %v1666_v52, %v1229_v7 }
 0x1ce   : > { %3270 = vmatmul.msk.bf16.gmra.mxu0 %vm1043_vm0, %v3769_v1 }
 0x1cf   : > { %v4454_v21 = vsel %vm1043_vm0, %v2416_v28, -inf  ;;  %3438 = vmatmul.msk.bf16.gmra.mxu1 %vm1043_vm0, %v3735_v8 }
 0x1d0   : > { %4752 = vst [vmem:[#allocation8_spill] sm:$0xff] %v4454_v21  ;;  %v2173_v11 = vpop.f32.mrf.mxu2  ;;  %v4459_v12 = vpop.f32.mrf.mxu3 }
 0x1d1   : > { %v2285_v13 = vadd.f32 %v2173_v11, %v1667_v9 }
 0x1d3   : > { %v1231_v17 = vpop.f32.mrf.mxu0  ;;  %v2353_v38 = vadd.f32 %v4179_v29, %v2285_v13 }
 0x1d4   : > { %v1668_v19 = vpop.f32.mrf.mxu1 }
 0x1d5   : > { %v1669_v24 = vadd.f32 %v1668_v19, %v1231_v17  ;;  %v2417_v49 = vmax.f32 %v2353_v38, 0.0 }
 0x1d7   : > { %v2511_v59 = vsel %vm1043_vm0, %v2417_v49, -inf }
 0x1d8   : > { %v2175_v26 = vpop.f32.mrf.mxu2  ;;  %v4461_v30 = vpop.f32.mrf.mxu3 }
 0x1d9   : > { %4753 = vst [vmem:[#allocation9_spill] sm:$0xff] %v4461_v30  ;;  %v2286_v33 = vadd.f32 %v2175_v26, %v1669_v24 }
 0x1db   : > { %v1234_v62 = vpop.f32.mrf.mxu0  ;;  %v2354_v63 = vadd.f32 %v4179_v29, %v2286_v33  ;;  %v3848_v33 = vld [vmem:[%s4735_s6] ss:$0 sm:$0xff] }
 0x1dc   : > { %v1671_v37 = vpop.f32.mrf.mxu1 }
 0x1dd   : > { %3675 = vmatmul.msk.bf16.gmra.mxu2 %vm1043_vm0, %v3804_v35  ;;  %v1672_v40 = vadd.f32 %v1671_v37, %v1234_v62  ;;  %v2418_v28 = vmax.f32 %v2354_v63, 0.0 }
 0x1de   : > { %3271 = vmatmul.msk.bf16.gmra.mxu0 %vm1043_vm0, %v3770_v27 }
 0x1df   : > { %3439 = vmatmul.msk.bf16.gmra.mxu1 %vm1043_vm0, %v3736_v36  ;;  %v2542_v19 = vsel %vm1043_vm0, %v2418_v28, -inf }
 0x1e0   : > { %v2178_v45 = vpop.f32.mrf.mxu2  ;;  %v4470_v48 = vpop.f32.mrf.mxu3 }
 0x1e1   : > { %v2287_v39 = vadd.f32 %v2178_v45, %v1672_v40 }
 0x1e3   : > { %v2355_v14 = vadd.f32 %v4179_v29, %v2287_v39  ;;  %v1236_v53 = vpop.f32.mrf.mxu0 }
 0x1e4   : > { %v1673_v54 = vpop.f32.mrf.mxu1 }
 0x1e5   : > { %v2419_v0 = vmax.f32 %v2355_v14, 0.0  ;;  %v1674_v1 = vadd.f32 %v1673_v54, %v1236_v53 }
 0x1e7   : > { %v2512_v6 = vsel %vm1043_vm0, %v2419_v0, -inf }
 0x1e8   : > { %v2513_v7 = vmax.f32 %v2511_v59, %v2512_v6  ;;  %v2180_v8 = vpop.f32.mrf.mxu2  ;;  %v4476_v52 = vpop.f32.mrf.mxu3 }
 0x1e9   : > { %4754 = vst [vmem:[#allocation10_spill] sm:$0xff] %v4476_v52  ;;  %v2288_v9 = vadd.f32 %v2180_v8, %v1674_v1  ;;  %v4498_v8 = vld [vmem:[%s4732_s3] ss:$0 sm:$0xff] }
 0x1eb   : > { %v2356_v11 = vadd.f32 %v4179_v29, %v2288_v9  ;;  %v1239_v13 = vpop.f32.mrf.mxu0 }
 0x1ec   : > { %v1676_v17 = vpop.f32.mrf.mxu1 }
 0x1ed   : > { %v2420_v24 = vmax.f32 %v2356_v11, 0.0  ;;  %v1677_v26 = vadd.f32 %v1676_v17, %v1239_v13 }
 0x1ef   : > { %v2543_v35 = vsel %vm1043_vm0, %v2420_v24, -inf  ;;  %v3849_v24 = vld [vmem:[%s4735_s6 + $0x1] ss:$0 sm:$0xff] }
 0x1f0   : > { %v2544_v27 = vmax.f32 %v2542_v19, %v2543_v35  ;;  %v2183_v62 = vpop.f32.mrf.mxu2  ;;  %v2612_v36 = vpop.f32.mrf.mxu3 }
 0x1f1   : > { %v2289_v37 = vadd.f32 %v2183_v62, %v1677_v26  ;;  %v4484_v38 = vadd.f32 %v3848_v33, %v2612_v36 }
 0x1f3   : > { %4755 = vst [vmem:[#allocation11_spill] sm:$0xff] %v4484_v38  ;;  %v2357_v40 = vadd.f32 %v4179_v29, %v2289_v37  ;;  %2922 = vrot.lane.b32.xlu2 %v4484_v38, %s3900_s26  ;;  %v1241_v45 = vpop.f32.mrf.mxu0  ;;  %v2618_v49 = vmul.f32 %v4484_v38, %v4484_v38 }
 0x1f4   : > { %v1678_v39 = vpop.f32.mrf.mxu1 }
 0x1f5   : > { %v2421_v14 = vmax.f32 %v2357_v40, 0.0  ;;  %v1679_v53 = vadd.f32 %v1678_v39, %v1241_v45  ;;  %v2620_v54 = vadd.f32 0.2, %v2618_v49 }
 0x1f7   : > { %v2514_v59 = vsel %vm1043_vm0, %v2421_v14, -inf  ;;  %2626 = vrot.lane.b32.xlu1 %v2620_v54, %s3901_s27 }
 0x1f8   : > { %v2515_v63 = vmax.f32 %v2513_v7, %v2514_v59  ;;  %v2185_v0 = vpop.f32.mrf.mxu2  ;;  %v2615_v29 = vpop.f32.mrf.mxu3 }
 0x1f9   : > { %v2290_v1 = vadd.f32 %v2185_v0, %v1679_v53  ;;  %v4493_v6 = vadd.f32 %v3848_v33, %v2615_v29 }
 0x1fb   : > { %4756 = vst [vmem:[#allocation12_spill] sm:$0xff] %v4493_v6  ;;  %v2358_v28 = vadd.f32 %v4498_v8, %v2290_v1  ;;  %2924 = vrot.lane.b32.xlu2 %v4493_v6, %s3900_s26  ;;  %v1244_v9 = vpop.f32.mrf.mxu0  ;;  %v2619_v11 = vmul.f32 %v4493_v6, %v4493_v6 }
 0x1fc   : > { %v1681_v7 = vpop.f32.mrf.mxu1 }
 0x1fd   : > { %v2422_v13 = vmax.f32 %v2358_v28, 0.0  ;;  %v1682_v17 = vadd.f32 %v1681_v7, %v1244_v9  ;;  %v2621_v19 = vadd.f32 0.2, %v2619_v11 }
 0x1ff   : > { %v2545_v26 = vsel %vm1043_vm0, %v2422_v13, -inf  ;;  %2628 = vrot.lane.b32.xlu1 %v2621_v19, %s3901_s27 }
 0x200   : > { %v2546_v33 = vmax.f32 %v2544_v27, %v2545_v26  ;;  %v2188_v35 = vpop.f32.mrf.mxu2  ;;  %v2712_v62 = vpop.f32.mrf.mxu3 }
 0x201   : > { %v2291_v36 = vadd.f32 %v2188_v35, %v1682_v17  ;;  %v4510_v37 = vadd.f32 %v3849_v24, %v2712_v62 }
 0x203   : > { %4757 = vst [vmem:[#allocation13_spill] sm:$0xff] %v4510_v37  ;;  %v2359_v40 = vadd.f32 %v4498_v8, %v2291_v36  ;;  %v1246_v45 = vpop.f32.mrf.mxu0  ;;  %v2718_v49 = vmul.f32 %v4510_v37, %v4510_v37 }
 0x204   : > { %v1683_v39 = vpop.f32.mrf.mxu1 }
 0x205   : > { %v2423_v14 = vmax.f32 %v2359_v40, 0.0  ;;  %v1684_v53 = vadd.f32 %v1683_v39, %v1246_v45  ;;  %v2720_v54 = vadd.f32 0.2, %v2718_v49 }
 0x207   : > { %v2516_v59 = vsel %vm1043_vm0, %v2423_v14, -inf  ;;  %2726 = vrot.lane.b32.xlu0 %v2720_v54, %s3901_s27 }
 0x208   : > { %v2517_v27 = vmax.f32 %v2515_v63, %v2516_v59  ;;  %v2190_v0 = vpop.f32.mrf.mxu2  ;;  %v2715_v29 = vpop.f32.mrf.mxu3 }
 0x209   : > { %v2292_v1 = vadd.f32 %v2190_v0, %v1684_v53  ;;  %v4517_v28 = vadd.f32 %v3849_v24, %v2715_v29 }
 0x20b   : > { %4758 = vst [vmem:[#allocation14_spill] sm:$0xff] %v4517_v28  ;;  %v2360_v9 = vadd.f32 %v4498_v8, %v2292_v1  ;;  %2934 = vrot.lane.b32.xlu1 %v4517_v28, %s3900_s26  ;;  %v1249_v11 = vpop.f32.mrf.mxu0  ;;  %v2719_v7 = vmul.f32 %v4517_v28, %v4517_v28 }
 0x20c   : > { %v1686_v13 = vpop.f32.mrf.mxu1 }
 0x20d   : > { %v2424_v17 = vmax.f32 %v2360_v9, 0.0  ;;  %v1687_v19 = vadd.f32 %v1686_v13, %v1249_v11  ;;  %v2721_v26 = vadd.f32 0.2, %v2719_v7 }
 0x20f   : > { %v2547_v63 = vsel %vm1043_vm0, %v2424_v17, -inf  ;;  %2728 = vrot.lane.b32.xlu0 %v2721_v26, %s3901_s27 }
 0x210   : > { %v2548_v35 = vmax.f32 %v2546_v33, %v2547_v63  ;;  %v2193_v24 = vpop.f32.mrf.mxu2 }
 0x211   : > { %v2293_v62 = vadd.f32 %v2193_v24, %v1687_v19 }
 0x213   : > { %v2361_v36 = vadd.f32 %v4498_v8, %v2293_v62  ;;  %v1251_v40 = vpop.f32.mrf.mxu0 }
 0x214   : > { %v1688_v45 = vpop.f32.mrf.mxu1 }
 0x215   : > { %v2425_v49 = vmax.f32 %v2361_v36, 0.0  ;;  %v1689_v39 = vadd.f32 %v1688_v45, %v1251_v40 }
 0x217   : > { %v2518_v14 = vsel %vm1043_vm0, %v2425_v49, -inf  ;;  %2932 = vrot.lane.b32.xlu0 %v4510_v37, %s3900_s26  ;;  %s730_s26 = scalar_lea.vmem %s4738_s9, %s3041_s25 }
 0x218   : > { %v4530_v53 = vmax.f32 %v2517_v27, %v2518_v14  ;;  %v2195_v54 = vpop.f32.mrf.mxu2 }
 0x219   : > { %v2294_v59 = vadd.f32 %v2195_v54, %v1689_v39 }
 0x21b   : > { %v2362_v0 = vadd.f32 %v4498_v8, %v2294_v59  ;;  %v1254_v33 = vpop.f32.mrf.mxu0 }
 0x21c   : > { %v1691_v29 = vpop.f32.mrf.mxu1 }
 0x21d   : > { %v2426_v1 = vmax.f32 %v2362_v0, 0.0  ;;  %v1692_v59 = vadd.f32 %v1691_v29, %v1254_v33 }
 0x21f   : > { %v2549_v9 = vsel %vm1043_vm0, %v2426_v1, -inf }
 0x220   : > { %v4534_v11 = vmax.f32 %v2548_v35, %v2549_v9  ;;  %v2198_v7 = vpop.f32.mrf.mxu2 }
 0x221   : > { %v2295_v1 = vadd.f32 %v2198_v7, %v1692_v59 }
 0x223   : > { %v1256_v13 = vpop.f32.mrf.mxu0  ;;  %v2363_v21 = vadd.f32 %v4498_v8, %v2295_v1 }
 0x224   : > { %v1693_v17 = vpop.f32.mrf.mxu1 }
 0x225   : > { %v1694_v44 = vadd.f32 %v1693_v17, %v1256_v13  ;;  %v2427_v37 = vmax.f32 %v2363_v21, 0.0  ;;  %v1732_v21 = vadd.f32 %v4329_v16, %v4229_v32  ;;  %v1737_v32 = vadd.f32 %v4349_v51, %v4245_v58 }
 0x226   : > { %v1739_v16 = vadd.f32 %v4355_v2, %v4249_v5 }
 0x227   : > { %v2311_v58 = vadd.f32 %v4437_v46, %v1732_v21  ;;  %v2313_v46 = vadd.f32 %v4459_v12, %v1737_v32  ;;  %v2374_v12 = vadd.f32 %v4498_v8, %v4391_v18  ;;  %v4760_v32 = vld [vmem:[#allocation9_spill] sm:$0xff] }
 0x228   : > { %v2200_v19 = vpop.f32.mrf.mxu2 }
 0x229   : > { %v2296_v52 = vadd.f32 %v2200_v19, %v1694_v44  ;;  %v1727_v44 = vadd.f32 %v4309_v47, %v4209_v4 }
 0x22b   : > { %v1259_v26 = vpop.f32.mrf.mxu0 }
 0x22c   : > { %v1696_v63 = vpop.f32.mrf.mxu1 }
 0x22d   : > { %v1697_v9 = vadd.f32 %v1696_v63, %v1259_v26  ;;  %v2520_v63 = vsel %vm1043_vm0, %v2427_v37, -inf }
 0x230   : > { %v2203_v24 = vpop.f32.mrf.mxu2 }
 0x231   : > { %v2297_v55 = vadd.f32 %v2203_v24, %v1697_v9  ;;  %v2379_v9 = vadd.f32 %v4498_v8, %v2311_v58 }
 0x233   : > { %v1261_v27 = vpop.f32.mrf.mxu0  ;;  %v2365_v30 = vadd.f32 %v4498_v8, %v2297_v55 }
 0x234   : > { %v1698_v62 = vpop.f32.mrf.mxu1 }
 0x235   : > { %v1699_v60 = vadd.f32 %v1698_v62, %v1261_v27  ;;  %v2429_v13 = vmax.f32 %v2365_v30, 0.0  ;;  %v2373_v30 = vadd.f32 %v4498_v8, %v4385_v3 }
 0x237   : > { %v2522_v4 = vsel %vm1043_vm0, %v2429_v13, -inf  ;;  %v2437_v62 = vmax.f32 %v2373_v30, 0.0 }
 0x238   : > { %v2205_v36 = vpop.f32.mrf.mxu2 }
 0x239   : > { %v2298_v17 = vadd.f32 %v2205_v36, %v1699_v60  ;;  %v1734_v60 = vadd.f32 %v4335_v31, %v4233_v43  ;;  %v2375_v43 = vadd.f32 %v4498_v8, %v4403_v42  ;;  %v2309_v31 = vadd.f32 %v4419_v10, %v1727_v44 }
 0x23a   : > { %v2530_v1 = vsel %vm1043_vm0, %v2437_v62, -inf  ;;  %v2376_v44 = vadd.f32 %v4498_v8, %v4409_v57 }
 0x23b   : > { %v1264_v40 = vpop.f32.mrf.mxu0 }
 0x23c   : > { %v1701_v45 = vpop.f32.mrf.mxu1 }
 0x23d   : > { %v1702_v56 = vadd.f32 %v1701_v45, %v1264_v40  ;;  %v2364_v40 = vadd.f32 %v4498_v8, %v2296_v52  ;;  %v2521_v52 = vmax.f32 %v4530_v53, %v2520_v63 }
 0x23f   : > { %v2523_v5 = vmax.f32 %v2521_v52, %v2522_v4 }
 0x240   : > { %v2208_v49 = vpop.f32.mrf.mxu2 }
 0x241   : > { %v2299_v38 = vadd.f32 %v2208_v49, %v1702_v56 }
 0x243   : > { %v1266_v39 = vpop.f32.mrf.mxu0  ;;  %v2367_v7 = vadd.f32 %v4498_v8, %v2299_v38 }
 0x244   : > { %v1703_v14 = vpop.f32.mrf.mxu1 }
 0x245   : > { %v1704_v26 = vadd.f32 %v1703_v14, %v1266_v39  ;;  %v2377_v39 = vadd.f32 %v4498_v8, %v2309_v31 }
 0x248   : > { %v2210_v54 = vpop.f32.mrf.mxu2 }
 0x249   : > { %v2300_v38 = vadd.f32 %v2210_v54, %v1704_v26 }
 0x24b   : > { %v1269_v0 = vpop.f32.mrf.mxu0  ;;  %v2368_v19 = vadd.f32 %v4498_v8, %v2300_v38 }
 0x24c   : > { %v1706_v35 = vpop.f32.mrf.mxu1 }
 0x24d   : > { %v1707_v22 = vadd.f32 %v1706_v35, %v1269_v0  ;;  %v2432_v59 = vmax.f32 %v2368_v19, 0.0 }
 0x250   : > { %v2213_v50 = vpop.f32.mrf.mxu2 }
 0x251   : > { %v2301_v33 = vadd.f32 %v2213_v50, %v1707_v22  ;;  %v1729_v22 = vadd.f32 %v4317_v61, %v4217_v15  ;;  %v2431_v50 = vmax.f32 %v2367_v7, 0.0  ;;  %v2366_v15 = vadd.f32 %v4498_v8, %v2298_v17 }
 0x253   : > { %v1271_v6 = vpop.f32.mrf.mxu0  ;;  %v2369_v24 = vadd.f32 %v4498_v8, %v2301_v33  ;;  %v2524_v53 = vsel %vm1043_vm0, %v2431_v50, -inf  ;;  %v2430_v2 = vmax.f32 %v2366_v15, 0.0  ;;  %v4759_v50 = vld [vmem:[#allocation7_spill] sm:$0xff] }
 0x254   : > { %v1708_v28 = vpop.f32.mrf.mxu1  ;;  %v2525_v14 = vmax.f32 %v2523_v5, %v2524_v53  ;;  %v2312_v38 = vadd.f32 %v4759_v50, %v1734_v60  ;;  %v2314_v60 = vadd.f32 %v4760_v32, %v1739_v16 }
 0x255   : > { %v1709_v45 = vadd.f32 %v1708_v28, %v1271_v6  ;;  %v2428_v6 = vmax.f32 %v2364_v40, 0.0  ;;  %v2433_v47 = vmax.f32 %v2369_v24, 0.0  ;;  %v1742_v28 = vadd.f32 %v4367_v23, %v4261_v20 }
 0x256   : > { %v1744_v20 = vadd.f32 %v4373_v41, %v4265_v34  ;;  %v2439_v23 = vmax.f32 %v2375_v43, 0.0  ;;  %v2553_v34 = vsel %vm1043_vm0, %v2430_v2, -inf  ;;  %v2441_v40 = vmax.f32 %v2377_v39, 0.0 }
 0x257   : > { %v2551_v51 = vsel %vm1043_vm0, %v2428_v6, -inf  ;;  %v2526_v42 = vsel %vm1043_vm0, %v2433_v47, -inf  ;;  %v2315_v7 = vadd.f32 %v4470_v48, %v1742_v28  ;;  %v2310_v24 = vadd.f32 %v4425_v25, %v1729_v22 }
 0x258   : > { %v2215_v29 = vpop.f32.mrf.mxu2  ;;  %v2552_v33 = vmax.f32 %v4534_v11, %v2551_v51  ;;  %v2532_v63 = vsel %vm1043_vm0, %v2439_v23, -inf  ;;  %v2381_v11 = vadd.f32 %v4498_v8, %v2313_v46  ;;  %v2438_v22 = vmax.f32 %v2374_v12, 0.0 }
 0x259   : > { %v2302_v61 = vadd.f32 %v2215_v29, %v1709_v45  ;;  %v2527_v29 = vmax.f32 %v2525_v14, %v2526_v42  ;;  %v2555_v45 = vsel %vm1043_vm0, %v2432_v59, -inf  ;;  %v2534_v52 = vsel %vm1043_vm0, %v2441_v40, -inf }
 0x25a   : > { %v2554_v21 = vmax.f32 %v2552_v33, %v2553_v34  ;;  %v2378_v15 = vadd.f32 %v4498_v8, %v2310_v24  ;;  %v2445_v47 = vmax.f32 %v2381_v11, 0.0  ;;  %v2380_v28 = vadd.f32 %v4498_v8, %v2312_v38 }
 0x25b   : > { %v1274_v56 = vpop.f32.mrf.mxu0  ;;  %v2370_v10 = vadd.f32 %v4498_v8, %v2302_v61  ;;  %v2440_v61 = vmax.f32 %v2376_v44, 0.0  ;;  %v2561_v5 = vsel %vm1043_vm0, %v2438_v22, -inf  ;;  %v2382_v16 = vadd.f32 %v4498_v8, %v2314_v60  ;;  %v4764_v60 = vld [vmem:[#allocation13_spill] sm:$0xff]  ;;  %v2846_v22 = vld [vmem:[%s4733_s4 + $0x18] sm:$0xff] }
 0x25c   : > { %v1711_v55 = vpop.f32.mrf.mxu1  ;;  %v2556_v6 = vmax.f32 %v2554_v21, %v2555_v45  ;;  %v2442_v2 = vmax.f32 %v2378_v15, 0.0  ;;  %v2538_v42 = vsel %vm1043_vm0, %v2445_v47, -inf  ;;  %v2444_v39 = vmax.f32 %v2380_v28, 0.0 }
 0x25d   : > { %v1712_v37 = vadd.f32 %v1711_v55, %v1274_v56  ;;  %v2434_v41 = vmax.f32 %v2370_v10, 0.0  ;;  %v2443_v55 = vmax.f32 %v2379_v9, 0.0  ;;  %v2563_v23 = vsel %vm1043_vm0, %v2440_v61, -inf }
 0x25e   : > { %v2567_v33 = vsel %vm1043_vm0, %v2444_v39, -inf }
 0x25f   : > { %v2557_v30 = vsel %vm1043_vm0, %v2434_v41, -inf }
 0x260   : > { %v2218_v3 = vpop.f32.mrf.mxu2  ;;  %v2558_v43 = vmax.f32 %v2556_v6, %v2557_v30 }
 0x261   : > { %v2303_v27 = vadd.f32 %v2218_v3, %v1712_v37  ;;  %v2383_v37 = vadd.f32 %v4498_v8, %v2315_v7  ;;  %v2536_v3 = vsel %vm1043_vm0, %v2443_v55, -inf }
 0x263   : > { %v2371_v36 = vadd.f32 %v4498_v8, %v2303_v27  ;;  %v1276_v49 = vpop.f32.mrf.mxu0  ;;  %v2447_v53 = vmax.f32 %v2383_v37, 0.0  ;;  %v4761_v27 = vld [vmem:[#allocation10_spill] sm:$0xff]  ;;  %v3692_v37 = vld [vmem:[%s4736_s7 + $0x8] sm:$0x1f] }
 0x264   : > { %v1713_v54 = vpop.f32.mrf.mxu1  ;;  %v2316_v62 = vadd.f32 %v4761_v27, %v1744_v20  ;;  %3693 = vmatpush.msk.msrb.mxu3 %vm2591_vm1, %v3692_v37 }
 0x265   : > { %v2435_v0 = vmax.f32 %v2371_v36, 0.0  ;;  %v1714_v35 = vadd.f32 %v1713_v54, %v1276_v49  ;;  %v4610_v14 = vsel %vm1043_vm0, %v2447_v53, -inf }
 0x266   : > { %v2384_v54 = vadd.f32 %v4498_v8, %v2316_v62 }
 0x267   : > { %v2528_v26 = vsel %vm1043_vm0, %v2435_v0, -inf  ;;  %v2565_v0 = vsel %vm1043_vm0, %v2442_v2, -inf }
 0x268   : > { %v2529_v13 = vmax.f32 %v2527_v29, %v2528_v26  ;;  %v2220_v17 = vpop.f32.mrf.mxu2  ;;  %v2448_v29 = vmax.f32 %v2384_v54, 0.0 }
 0x269   : > { %v2304_v48 = vadd.f32 %v2220_v17, %v1714_v35  ;;  %v4587_v56 = vpop.permute.xlu1 %2626  ;;  %v2446_v35 = vmax.f32 %v2382_v16, 0.0 }
 0x26a   : > { %v2531_v18 = vmax.f32 %v2529_v13, %v2530_v1  ;;  %3851 = vrcp.f32 %v4587_v56  ;;  %v4627_v40 = vsel %vm1043_vm0, %v2448_v29, -inf  ;;  %vm2637_vm4 = vweird.f32 %v4587_v56 }
 0x26b   : > { %v2372_v25 = vadd.f32 %v4498_v8, %v2304_v48  ;;  %v2569_v41 = vsel %vm1043_vm0, %v2446_v35, -inf  ;;  %v2573_v8 = vlaneseq  ;;  %v2641_v30 = vand.u32 2147483647, %v4587_v56 }
 0x26c   : > { %v2533_v4 = vmax.f32 %v2531_v18, %v2532_v63  ;;  %v2643_v18 = vand.u32 2147483648, %v4587_v56 }
 0x26d   : > { %v2436_v57 = vmax.f32 %v2372_v25, 0.0  ;;  %v2574_v17 = vand.u32 127, %v2573_v8  ;;  %vm2642_vm8 = vcmp.eq.f32.partialorder %v2641_v30, 8.507059e+37 }
 0x26e   : > { %v2535_v31 = vmax.f32 %v2533_v4, %v2534_v52  ;;  %v2776_v4 = vld [vmem:[%s4736_s7] sm:$0x1f] }
 0x26f   : > { %v2559_v19 = vsel %vm1043_vm0, %v2436_v57, -inf  ;;  %v2575_v55 = vadd.s32 1, %v2574_v17  ;;  %3696 = vmatpush.msk.msra.mxu3 %vm2591_vm1, %v2776_v4  ;;  %v2844_v4 = vld [vmem:[%s4733_s4 + $0x8] sm:$0xff] }
 0x270   : > { %v2537_v58 = vmax.f32 %v2535_v31, %v2536_v3  ;;  %v2560_v51 = vmax.f32 %v2558_v43, %v2559_v19  ;;  %v3852_v49 = vpop.eup %3851  ;;  %v4765_v19 = vld [vmem:[#allocation11_spill] sm:$0xff] }
 0x271   : > { %v4612_v20 = vpop.permute.xlu1 %2628  ;;  %v2633_v9 = vmul.f32 %v3852_v49, %v4587_v56  ;;  %vm2638_vm3 = vweird.f32 %v3852_v49  ;;  %v2576_v15 = vcvt.s32.f32 %v2575_v55  ;;  %v2644_v56 = vor.u32 1.1754944e-38, %v2643_v18 }
 0x272   : > { %v4606_v10 = vmax.f32 %v2537_v58, %v2538_v42  ;;  %v2562_v36 = vmax.f32 %v2560_v51, %v2561_v5  ;;  %3853 = vrcp.f32 %v4612_v20  ;;  %vm4640_vm5 = vmor %vm2637_vm4, %vm2638_vm3  ;;  %vm2652_vm11 = vweird.f32 %v4612_v20 }
 0x273   : > { %v2634_v26 = vsub.f32 1.0, %v2633_v9  ;;  %v2722_v43 = vsub.f32 %v2576_v15, %v4764_v60  ;;  %v2622_v27 = vsub.f32 %v2576_v15, %v4765_v19  ;;  %v2656_v42 = vand.u32 2147483647, %v4612_v20 }
 0x274   : > { %v2564_v46 = vmax.f32 %v2562_v36, %v2563_v23  ;;  %v2541_v59 = vmax.f32 %v4606_v10, %v4610_v14  ;;  %v2658_v16 = vand.u32 2147483648, %v4612_v20 }
 0x275   : > { %v2635_v24 = vmul.f32 %v3852_v49, %v2634_v26  ;;  %vm2657_vm3 = vcmp.eq.f32.partialorder %v2656_v42, 8.507059e+37  ;;  %v4772_v42 = vld [vmem:[#allocation8_spill] sm:$0xff] }
 0x276   : > { %v2566_v1 = vmax.f32 %v2564_v46, %v2565_v0  ;;  %v4766_v0 = vld [vmem:[#allocation14_spill] sm:$0xff] }
 0x277   : > { %v2636_v21 = vadd.f32 %v3852_v49, %v2635_v24  ;;  %v2723_v35 = vsub.f32 %v2576_v15, %v4766_v0 }
 0x278   : > { %v2568_v7 = vmax.f32 %v2566_v1, %v2567_v33  ;;  %v4624_v63 = vpop.eup %3853  ;;  %v2659_v1 = vor.u32 1.1754944e-38, %v2658_v16 }
 0x279   : > { %v2727_v34 = vpop.permute.xlu0 %2726  ;;  %v2648_v11 = vmul.f32 %v4624_v63, %v4612_v20  ;;  %v2640_v47 = vsel %vm4640_vm5, %v3852_v49, %v2636_v21  ;;  %vm2653_vm12 = vweird.f32 %v4624_v63 }
 0x27a   : > { %3855 = vrcp.f32 %v2727_v34  ;;  %v4622_v12 = vmax.f32 %v2568_v7, %v2569_v41  ;;  %v2743_v25 = vand.u32 2147483648, %v2727_v34  ;;  %v2741_v6 = vand.u32 2147483647, %v2727_v34  ;;  %vm2654_vm14 = vmor %vm2652_vm11, %vm2653_vm12 }
 0x27b   : > { %v2649_v50 = vsub.f32 1.0, %v2648_v11  ;;  %vm2737_vm7 = vweird.f32 %v2727_v34  ;;  %v4652_v3 = vsel %vm2642_vm8, %v2644_v56, %v2640_v47  ;;  %v2843_v56 = vld [vmem:[%s4733_s4] sm:$0xff] }
 0x27c   : > { %v2572_v13 = vmax.f32 %v4622_v12, %v4627_v40  ;;  %v2744_v31 = vor.u32 1.1754944e-38, %v2743_v25  ;;  %vm2742_vm10 = vcmp.eq.f32.partialorder %v2741_v6, 8.507059e+37  ;;  %v2646_v2 = vmul.f32 %v4652_v3, %v2622_v27  ;;  %v3702_v27 = vld [vmem:[%s4733_s4 + $0x28] sm:$0xff] }
 0x27d   : > { %v2650_v57 = vmul.f32 %v4624_v63, %v2649_v50 }
 0x27e   : > { %v2662_v33 = vmul.f32 1.442695, %v2646_v2  ;;  %v4771_v2 = vld [vmem:[#allocation5_spill] sm:$0xff] }
 0x27f   : > { %v2651_v58 = vadd.f32 %v4624_v63, %v2650_v57  ;;  %v4773_v16 = vmax.f32 %v4771_v2, %v4772_v42 }
 0x280   : > { %v3856_v45 = vpop.eup %3855 }
 0x281   : > { %v2733_v48 = vmul.f32 %v3856_v45, %v2727_v34  ;;  %v2729_v44 = vpop.permute.xlu0 %2728  ;;  %vm2738_vm6 = vweird.f32 %v3856_v45  ;;  %v2655_v46 = vsel %vm2654_vm14, %v4624_v63, %v2651_v58  ;;  %v4767_v34 = vld [vmem:[#allocation12_spill] sm:$0xff] }
 0x282   : > { %3857 = vrcp.f32 %v2729_v44  ;;  %vm2739_vm9 = vmor %vm2737_vm7, %vm2738_vm6  ;;  %v2758_v36 = vand.u32 2147483648, %v2729_v44  ;;  %v2756_v39 = vand.u32 2147483647, %v2729_v44  ;;  %vm2752_vm15 = vweird.f32 %v2729_v44  ;;  %v4768_v58 = vld [vmem:[#allocation4_spill] sm:$0xff] }
 0x283   : > { %v2734_v38 = vsub.f32 1.0, %v2733_v48  ;;  %v2660_v7 = vsel %vm2657_vm3, %v2659_v1, %v2655_v46  ;;  %v2623_v41 = vsub.f32 %v2576_v15, %v4767_v34  ;;  %v3850_v1 = vld [vmem:[%s4737_s8] ss:$0 sm:$0xff] }
 0x284   : > { %v2759_v9 = vor.u32 1.1754944e-38, %v2758_v36  ;;  %vm2757_vm4 = vcmp.eq.f32.partialorder %v2756_v39, 8.507059e+37 }
 0x285   : > { %v2735_v52 = vmul.f32 %v3856_v45, %v2734_v38  ;;  %v2661_v24 = vmul.f32 %v2660_v7, %v2623_v41 }
 0x287   : > { %v2736_v61 = vadd.f32 %v3856_v45, %v2735_v52  ;;  %v2845_v52 = vld [vmem:[%s4733_s4 + $0x10] sm:$0xff] }
 0x288   : > { %v3858_v32 = vpop.eup %3857 }
 0x289   : > { %v2740_v28 = vsel %vm2739_vm9, %v3856_v45, %v2736_v61  ;;  %v2748_v53 = vmul.f32 %v3858_v32, %v2729_v44  ;;  %vm2753_vm13 = vweird.f32 %v3858_v32  ;;  %v2664_v45 = vmul.f32 1.442695, %v2661_v24  ;;  %v2933_v40 = vpop.permute.xlu0 %2932 }
 0x28a   : > { %v2745_v62 = vsel %vm2742_vm10, %v2744_v31, %v2740_v28  ;;  %vm2754_vm1 = vmor %vm2752_vm15, %vm2753_vm13  ;;  %v3704_v31 = vld [vmem:[%s4733_s4 + $0x38] sm:$0xff] }
 0x28b   : > { %v2746_v51 = vmul.f32 %v2745_v62, %v2722_v43  ;;  %v2749_v5 = vsub.f32 1.0, %v2748_v53  ;;  %v3703_v53 = vld [vmem:[%s4733_s4 + $0x30] sm:$0xff] }
 0x28d   : > { %v2762_v49 = vmul.f32 1.442695, %v2746_v51  ;;  %v2750_v23 = vmul.f32 %v3858_v32, %v2749_v5  ;;  %v4769_v51 = vld [vmem:[#allocation6_spill] sm:$0xff] }
 0x28e   : > { %v4770_v5 = vmax.f32 %v4768_v58, %v4769_v51 }
 0x28f   : > { %3859 = vpow2.f32 %v2762_v49  ;;  %v2751_v54 = vadd.f32 %v3858_v32, %v2750_v23 }
 0x290   : > { %3861 = vpow2.f32 %v2662_v33 }
 0x291   : > { %v2755_v20 = vsel %vm2754_vm1, %v3858_v32, %v2751_v54 }
 0x292   : > { %v2760_v29 = vsel %vm2757_vm4, %v2759_v9, %v2755_v20 }
 0x293   : > { %v2761_v8 = vmul.f32 %v2760_v29, %v2723_v35 }
 0x295   : > { %v3860_v26 = vpop.eup %3859  ;;  %v2764_v17 = vmul.f32 1.442695, %v2761_v8 }
 0x296   : > { %v2766_v11 = vsub.f32 0.0, %v3860_v26  ;;  %v3862_v48 = vpop.eup %3861 }
 0x297   : > { %3863 = vpow2.f32 %v2764_v17  ;;  %v2666_v55 = vsub.f32 0.0, %v3862_v48  ;;  %v2935_v17 = vpop.permute.xlu1 %2934 }
 0x298   : > { %v2768_v63 = vmul.f32 1.442695, %v2766_v11 }
 0x299   : > { %v2668_v37 = vmul.f32 1.442695, %v2666_v55 }
 0x29a   : > { %3865 = vpow2.f32 %v2768_v63 }
 0x29b   : > { %3867 = vpow2.f32 %v2664_v45 }
 0x29d   : > { %v3864_v44 = vpop.eup %3863 }
 0x29e   : > { %v2767_v21 = vsub.f32 0.0, %v3864_v44 }
 0x2a0   : > { %v3866_v18 = vpop.eup %3865  ;;  %v2770_v50 = vmul.f32 1.442695, %v2767_v21 }
 0x2a1   : > { %v2772_v38 = vmul.f32 %v3866_v18, %v3860_v26  ;;  %v3868_v30 = vpop.eup %3867 }
 0x2a2   : > { %3869 = vpow2.f32 %v2770_v50  ;;  %v2667_v6 = vsub.f32 0.0, %v3868_v30 }
 0x2a3   : > { %v2774_v25 = vmul.f32 %v2772_v38, %v2745_v62  ;;  %3871 = vpow2.f32 %v2668_v37 }
 0x2a4   : > { %v2670_v57 = vmul.f32 1.442695, %v2667_v6 }
 0x2a5   : > { %3694 = vmatmul.msk.f32.vlgmr.msrb.gmra.mxu3 %vm2584_vm2, %v2774_v25 }
 0x2a6   : > { %2865 = vmatpush.msrb.mxu3 %v2846_v22  ;;  %3873 = vpow2.f32 %v2670_v57 }
 0x2a8   : > { %v3870_v15 = vpop.eup %3869  ;;  %2866 = vmatpush.msrb.mxu3 %v2845_v52 }
 0x2a9   : > { %v2773_v47 = vmul.f32 %v3870_v15, %v3864_v44  ;;  %v3872_v32 = vpop.eup %3871 }
 0x2aa   : > { %2867 = vmatpush.msrb.mxu3 %v2844_v4  ;;  %v2672_v60 = vmul.f32 %v3872_v32, %v3862_v48 }
 0x2ab   : > { %v2775_v61 = vmul.f32 %v2773_v47, %v2760_v29 }
 0x2ac   : > { %2868 = vmatpush.msrb.mxu3 %v2843_v56  ;;  %v2674_v43 = vmul.f32 %v2672_v60, %v4652_v3  ;;  %v3874_v28 = vpop.eup %3873  ;;  %v3701_v3 = vld [vmem:[%s4733_s4 + $0x20] sm:$0xff] }
 0x2ad   : > { %3695 = vmatmul.msk.f32.gmra.mxu3 %vm2584_vm2, %v2775_v61  ;;  %v2673_v19 = vmul.f32 %v3874_v28, %v3868_v30 }
 0x2af   : > { %v2675_v62 = vmul.f32 %v2673_v19, %v2660_v7 }
 0x2b5   : > { %3697 = vmatmul.msk.f32.vlgmr.msra.gmra.mxu3 %vm2584_vm2, %v2674_v43 }
 0x2b6   : > { %2901 = vmatpush.msra.mxu3 %v3704_v31 }
 0x2b8   : > { %2902 = vmatpush.msra.mxu3 %v3703_v53 }
 0x2ba   : > { %2903 = vmatpush.msra.mxu3 %v3702_v27 }
 0x2bc   : > { %2904 = vmatpush.msra.mxu3 %v3701_v3 }
 0x2bd   : > { %3698 = vmatmul.msk.f32.gmra.mxu3 %vm2584_vm2, %v2675_v62 }
 0x2c5   : > { %3699 = vmatmul.msk.f32.vlgmr.msrb.gmra.mxu3 %vm1043_vm0, %v4770_v5 }
 0x2cd   : > { %3700 = vmatmul.msk.f32.gmra.mxu3 %vm1043_vm0, %v4773_v16 }
 0x2d5   : > { %3705 = vmatmul.msk.f32.vlgmr.msra.gmra.mxu3 %vm1043_vm0, %v2541_v59  ;;  %v2923_v59 = vpop.permute.xlu2 %2922 }
 0x2dd   : > { %3706 = vmatmul.msk.f32.gmra.mxu3 %vm1043_vm0, %v2572_v13  ;;  %v2925_v8 = vpop.permute.xlu2 %2924  ;;  %vm2946_vm0 = vcmask 7168  }
 0x328   : > { %v2805_v36 = vpop.f32.mrf.mxu3 }
 0x330   : > { %v2808_v49 = vpop.f32.mrf.mxu3 }
 0x338   : > { %v2837_v23 = vpop.f32.mrf.mxu3 }
 0x339   : > { %v2838_v0 = vadd.f32 %v2837_v23, %v2805_v36 }
 0x340   : > { %v2840_v39 = vpop.f32.mrf.mxu3 }
 0x341   : > { %v2841_v33 = vadd.f32 %v2840_v39, %v2808_v49 }
 0x348   : > { %v2870_v54 = vpop.f32.mrf.mxu3 }
 0x349   : > { %v2876_v35 = vadd.f32 %v2870_v54, %v2838_v0 }
 0x350   : > { %v2873_v46 = vpop.f32.mrf.mxu3 }
 0x351   : > { %v2877_v13 = vadd.f32 %v2873_v46, %v2841_v33 }
 0x358   : > { %v2906_v10 = vpop.f32.mrf.mxu3 }
 0x359   : > { %v2912_v14 = vadd.f32 %v2906_v10, %v2876_v35 }
 0x35b   : > { %v2918_v9 = vadd.f32 %v3850_v1, %v2912_v14 }
 0x35d   : > { %v2928_v12 = vmul.f32 %v2923_v59, %v2918_v9 }
 0x35f   : > { %v2938_v20 = vmul.f32 %v2933_v40, %v2928_v12 }
 0x360   : > { %v2909_v29 = vpop.f32.mrf.mxu3 }
 0x361   : > { %v2913_v7 = vadd.f32 %v2909_v29, %v2877_v13  ;;  %v2940_v34 = vsel %vm2584_vm2, %v2938_v20, 0.0 }
 0x362   : > { %2941 = vadd.xlane.f32.xlu2 %v2940_v34 }
 0x363   : > { %v2919_v41 = vadd.f32 %v3850_v1, %v2913_v7 }
 0x365   : > { %v2929_v26 = vmul.f32 %v2925_v8, %v2919_v41 }
 0x367   : > { %v2939_v24 = vmul.f32 %v2935_v17, %v2929_v26 }
 0x369   : > { %v2943_v11 = vsel %vm2584_vm2, %v2939_v24, 0.0 }
 0x36a   : > { %2944 = vadd.xlane.f32.xlu0 %v2943_v11 }
 0x3d5   : > { %v2942_v63 = vpop.xlane.xlu2 %2941 }
 0x3d6   : > { %2947 = vst.msk [vmem:[%s730_s26] sm:$0xff] %vm2946_vm0, %v2942_v63 }
 0x3dd   : > { %v2945_v45 = vpop.xlane.xlu0 %2944 }
 0x3de   : > { %2948 = vst.msk [vmem:[%s730_s26 + $0x8] sm:$0xff] %vm2946_vm0, %v2945_v45 }
 0x3df PF: > { %p16_p9 = scmp.ge.s32.totalorder %s3969_s13, 4   ;;  %s4774_s30 = smov %s3894_s10 }
 0x3e0   : > { %s4775_s10 = smov %s3978_s16  ;;  %s4776_s11 = smov %s3969_s13 }
 0x3e1   :  { %18 = sbr.rel (!%p16_p9) target bundleno = 2 (0x2), region = 187 }

</bundles_post_ra>
